<compile_context>
chip_gen: v6e
topology: v6e:2x2x1
jax: 0.10.0
libtpu: 0.0.40
codegen_flags: <defaults>
</compile_context>

<pallas_src>
import functools

import jax
import jax.numpy as jnp
from jax import lax
from jax.experimental import pallas as pl
from jax.experimental.pallas import tpu as pltpu


MASK_VALUE = -1e30  # large finite negative (safe under f32; diagonal never masked)


# ----------------------------------------------------------------------------
# Fused kernel: QKV projection + per-head causal attention + output projection,
# one batch block (Bb elements) per grid step.
# ----------------------------------------------------------------------------
def fused_mha_kernel(x_ref, wqkv_ref, wproj_ref, bproj_ref, o_ref, *, H, hs, Bb):
    T = x_ref.shape[1]
    C = x_ref.shape[2]
    Hs = H * hs

    # Single lane-dense QKV matmul for the whole batch block (bf16 x bf16 -> f32).
    x = x_ref[...].reshape(Bb * T, C)                       # (Bb*T, C)   bf16
    w_qkv = wqkv_ref[...]                                   # (C, 3*Hs)   bf16
    qkv = jnp.dot(x, w_qkv, preferred_element_type=jnp.float32)   # (Bb*T, 3*Hs) f32
    qkv = qkv.astype(jnp.bfloat16)                          # operands for next MXU passes

    w_proj = wproj_ref[...]                                 # (Hs, C)     bf16
    b_proj = bproj_ref[...]                                 # (1, C)      f32

    # Causal (lower-triangular) mask, built once; the int32 iotas are consumed
    # immediately and only the bool mask stays live across heads.
    row = lax.broadcasted_iota(jnp.int32, (T, T), 0)
    col = lax.broadcasted_iota(jnp.int32, (T, T), 1)
    causal = row >= col

    for b in range(Bb):                       # static, Bb is small & compile-time
        r0 = b * T
        y = jnp.zeros((T, C), jnp.float32)    # lane-dense f32 accumulator

        for h in range(H):                    # static, H is small & compile-time
            c0 = h * hs
            q_h = qkv[r0:r0 + T, 0 * Hs + c0:0 * Hs + c0 + hs]   # (T, hs) bf16 (scale folded)
            k_h = qkv[r0:r0 + T, 1 * Hs + c0:1 * Hs + c0 + hs]   # (T, hs) bf16
            v_h = qkv[r0:r0 + T, 2 * Hs + c0:2 * Hs + c0 + hs]   # (T, hs) bf16

            # scores = q_h @ k_h^T (contraction over hs; no materialized transpose).
            scores = lax.dot_general(
                q_h, k_h,
                dimension_numbers=(((1,), (1,)), ((), ())),
                preferred_element_type=jnp.float32)               # (T, T) f32
            scores = jnp.where(causal, scores, MASK_VALUE)

            # Numerically stable softmax, all math in f32 (VPU + EUP).
            scores = scores - jnp.max(scores, axis=-1, keepdims=True)
            p = jnp.exp(scores)
            inv = pl.reciprocal(jnp.sum(p, axis=-1, keepdims=True), approx=True)
            p = (p * inv).astype(jnp.bfloat16)                    # bf16 MXU operand

            out_h = jnp.dot(p, v_h, preferred_element_type=jnp.float32)   # (T, hs) f32

            # Fold the head-concat away: accumulate this head's slice of the
            # output projection. Output is lane-dense (T, C); no relayouts.
            y = y + jnp.dot(out_h.astype(jnp.bfloat16),
                            w_proj[c0:c0 + hs, :],
                            preferred_element_type=jnp.float32)

        o_ref[b] = (y + b_proj).astype(o_ref.dtype)


# ----------------------------------------------------------------------------
# Wrapper helpers
# ----------------------------------------------------------------------------
def _vmem_limit_bytes():
    """Generation-aware VMEM budget: ~3/4 of physical VMEM per TensorCore
    (v5e/v6e: 128 MiB -> 96 MiB; v7x: 64 MiB -> 48 MiB), leaving headroom for
    Mosaic internal scratch."""
    default = 48 * 1024 * 1024
    try:
        cap = pltpu.get_tpu_info().vmem_capacity_bytes
    except Exception:
        return default
    return max(16 * 1024 * 1024, min((cap * 3) // 4, 96 * 1024 * 1024))


def _choose_batch_block(B):
    """Largest divisor of B that is <= 8 (amortizes per-step pipeline overhead)
    while keeping >= 2 grid steps so the parallel batch axis can shard across
    both TensorCores on v7x."""
    best = 1
    for bb in range(1, min(B, 8) + 1):
        if B % bb == 0 and (B // bb >= 2 or B == 1):
            best = bb
    return best


# ----------------------------------------------------------------------------
# Wrapper
# ----------------------------------------------------------------------------
def multi_head_attention(x, wq, wk, wv, w_proj, b_proj):
    """x: (B, T, C); wq/wk/wv: (H, hs, C); w_proj: (C, H*hs); b_proj: (C,)."""
    B, T, C = x.shape
    H, hs, _ = wq.shape
    Hs = H * hs

    # ---- wrapper-side (free) layout / dtype plumbing --------------------------
    # Fold the 1/sqrt(hs) attention scale into the query weights.
    wq_scaled = wq * (float(hs) ** -0.5)
    # Stack + pre-transpose so the kernel does x @ W with no in-kernel transpose.
    # Columns laid out [Q heads | K heads | V heads]. bf16 operands, f32 accum.
    w_qkv = jnp.concatenate(
        [wq_scaled.reshape(Hs, C), wk.reshape(Hs, C), wv.reshape(Hs, C)],
        axis=0).T.astype(jnp.bfloat16)                  # (C, 3*Hs)
    w_proj_t = w_proj.T.astype(jnp.bfloat16)            # (Hs, C)
    b2d = b_proj.reshape(1, C).astype(jnp.float32)      # bias stays exact (f32)
    x_bf = x.astype(jnp.bfloat16)

    Bb = _choose_batch_block(B)
    grid = (B // Bb,)

    def call(resident_mode):
        kernel = functools.partial(fused_mha_kernel, H=H, hs=hs, Bb=Bb)

        def wspec(shape):
            imap = lambda b, _n=len(shape): (0,) * _n
            if resident_mode is None:
                return pl.BlockSpec(shape, imap)
            return pl.BlockSpec(shape, imap, pipeline_mode=resident_mode)

        return pl.pallas_call(
            kernel,
            out_shape=jax.ShapeDtypeStruct((B, T, C), x.dtype),
            grid_spec=pltpu.PrefetchScalarGridSpec(
                num_scalar_prefetch=0,
                grid=grid,
                in_specs=[
                    pl.BlockSpec((Bb, T, C), lambda b: (b, 0, 0)),   # x
                    wspec((C, 3 * Hs)),                              # W_qkv   (resident)
                    wspec((Hs, C)),                                  # W_proj^T(resident)
                    wspec((1, C)),                                   # bias    (resident)
                ],
                out_specs=pl.BlockSpec((Bb, T, C), lambda b: (b, 0, 0)),
            ),
            compiler_params=pltpu.CompilerParams(
                dimension_semantics=("parallel",),
                vmem_limit_bytes=_vmem_limit_bytes(),
            ),
        )(x_bf, w_qkv, w_proj_t, b2d)

    try:
        # Single-buffer the grid-invariant weights (halves their VMEM footprint).
        return jax.block_until_ready(call(pl.Buffered(1)))
    except Exception:
        # Fallback: default 2-deep pipelining (functionally identical; just keeps
        # the redundant double-buffer on the resident weights).
        return jax.block_until_ready(call(None))


# ----------------------------------------------------------------------------
# Pure-JAX reference for verification (mirrors the PyTorch module, eval mode)
# ----------------------------------------------------------------------------
def reference(x, wq, wk, wv, w_proj, b_proj):
    B, T, C = x.shape
    H, hs, _ = wq.shape
    heads = []
    tril = jnp.tril(jnp.ones((T, T)))
    for h in range(H):
        q = x @ wq[h].T
        k = x @ wk[h].T
        v = x @ wv[h].T
        att = (q @ jnp.swapaxes(k, -2, -1)) * (hs ** -0.5)
        att = jnp.where(tril == 0, -jnp.inf, att)
        att = jax.nn.softmax(att, axis=-1)
        heads.append(att @ v)
    cat = jnp.concatenate(heads, axis=-1)
    return cat @ w_proj.T + b_proj


if __name__ == "__main__":
    # small config: n_embd=32, n_head=num_heads=4, head_size=8, block_size=T=8
    B, T, C = 2, 8, 32
    H, hs = 4, 8

    key = jax.random.PRNGKey(0)
    kx, kq, kk, kv, kw, kb = jax.random.split(key, 6)

    x = jax.random.normal(kx, (B, T, C), dtype=jnp.float32)
    wq = jax.random.normal(kq, (H, hs, C), dtype=jnp.float32) * 0.1
    wk = jax.random.normal(kk, (H, hs, C), dtype=jnp.float32) * 0.1
    wv = jax.random.normal(kv, (H, hs, C), dtype=jnp.float32) * 0.1
    w_proj = jax.random.normal(kw, (C, H * hs), dtype=jnp.float32) * 0.1
    b_proj = jax.random.normal(kb, (C,), dtype=jnp.float32) * 0.1

    out = multi_head_attention(x, wq, wk, wv, w_proj, b_proj)
    out = jax.block_until_ready(out)

    ref = reference(x, wq, wk, wv, w_proj, b_proj)
    assert out.shape == (B, T, C)
    # Tolerance covers bf16 MXU operands (f32 accumulation) + EUP approx reciprocal.
    assert jnp.allclose(out, ref, atol=3e-2, rtol=3e-2), "mismatch vs reference"

    print("KERNEL_OK")
</pallas_src>

<mosaic_0001>
module attributes {stable_mosaic.version = 11 : i64} {
  func.func @fused_mha_kernel(%arg0: i32, %arg1: memref<1x8x32xbf16, #tpu.memory_space<vmem>>, %arg2: memref<32x96xbf16, #tpu.memory_space<vmem>>, %arg3: memref<32x32xbf16, #tpu.memory_space<vmem>>, %arg4: memref<1x32xf32, #tpu.memory_space<vmem>>, %arg5: memref<1x8x32xf32, #tpu.memory_space<vmem>>) attributes {dimension_semantics = [#tpu.dimension_semantics<parallel>], iteration_bounds = array<i64: 2>, scalar_prefetch = 0 : i64, scratch_operands = 0 : i64, tpu.core_type = #tpu.core_type<tc>, window_params = [{transform_indices = @transform_0, window_bounds = array<i64: 1, 8, 32>}, {pipeline_mode = #tpu.pipeline_mode<synchronous>, transform_indices = @transform_1, window_bounds = array<i64: 32, 96>}, {pipeline_mode = #tpu.pipeline_mode<synchronous>, transform_indices = @transform_2, window_bounds = array<i64: 32, 32>}, {pipeline_mode = #tpu.pipeline_mode<synchronous>, transform_indices = @transform_3, window_bounds = array<i64: 1, 32>}, {transform_indices = @transform_4, window_bounds = array<i64: 1, 8, 32>}]} {
    %c0 = arith.constant 0 : index
    %c0_0 = arith.constant 0 : index
    %c0_1 = arith.constant 0 : index
    %0 = vector.load %arg1[%c0, %c0_0, %c0_1] : memref<1x8x32xbf16, #tpu.memory_space<vmem>>, vector<1x8x32xbf16>
    %1 = vector.shape_cast %0 : vector<1x8x32xbf16> to vector<8x32xbf16>
    %c0_2 = arith.constant 0 : index
    %c0_3 = arith.constant 0 : index
    %2 = vector.load %arg2[%c0_2, %c0_3] : memref<32x96xbf16, #tpu.memory_space<vmem>>, vector<32x96xbf16>
    %cst = arith.constant dense<0.000000e+00> : vector<8x96xf32>
    %3 = tpu.matmul %1, %2, %cst {dimension_numbers = #tpu.dot_dimension_numbers<[1], [0], [0], [1], [0, 0, 1, 1], [], []>} : vector<8x32xbf16>, vector<32x96xbf16>, vector<8x96xf32> -> vector<8x96xf32>
    %4 = arith.truncf %3 : vector<8x96xf32> to vector<8x96xbf16>
    %c0_4 = arith.constant 0 : index
    %c0_5 = arith.constant 0 : index
    %5 = vector.load %arg3[%c0_4, %c0_5] : memref<32x32xbf16, #tpu.memory_space<vmem>>, vector<32x32xbf16>
    %c0_6 = arith.constant 0 : index
    %c0_7 = arith.constant 0 : index
    %6 = vector.load %arg4[%c0_6, %c0_7] : memref<1x32xf32, #tpu.memory_space<vmem>>, vector<1x32xf32>
    %7 = tpu.iota {dimensions = array<i32: 0>} : vector<8x8xi32>
    %8 = tpu.iota {dimensions = array<i32: 1>} : vector<8x8xi32>
    %9 = arith.cmpi sge, %7, %8 : vector<8x8xi32>
    %cst_8 = arith.constant 0.000000e+00 : f32
    %10 = vector.broadcast %cst_8 : f32 to vector<8x32xf32>
    %11 = vector.extract_strided_slice %4 {offsets = [0, 0], sizes = [8, 8], strides = [1, 1]} : vector<8x96xbf16> to vector<8x8xbf16>
    %12 = vector.extract_strided_slice %4 {offsets = [0, 32], sizes = [8, 8], strides = [1, 1]} : vector<8x96xbf16> to vector<8x8xbf16>
    %13 = vector.extract_strided_slice %4 {offsets = [0, 64], sizes = [8, 8], strides = [1, 1]} : vector<8x96xbf16> to vector<8x8xbf16>
    %cst_9 = arith.constant dense<0.000000e+00> : vector<8x8xf32>
    %14 = tpu.matmul %11, %12, %cst_9 {dimension_numbers = #tpu.dot_dimension_numbers<[1], [1], [0], [0], [0, 0, 1, 0], [], []>} : vector<8x8xbf16>, vector<8x8xbf16>, vector<8x8xf32> -> vector<8x8xf32>
    %cst_10 = arith.constant -1.000000e+30 : f32
    %15 = vector.broadcast %cst_10 : f32 to vector<8x8xf32>
    %16 = arith.select %9, %14, %15 : vector<8x8xi1>, vector<8x8xf32>
    %cst_11 = arith.constant dense<0xFF800000> : vector<8xf32>
    %17 = vector.multi_reduction <maximumf>, %16, %cst_11 [1] : vector<8x8xf32> to vector<8xf32>
    %18 = vector.shape_cast %17 : vector<8xf32> to vector<8x1xf32>
    %19 = vector.broadcast %18 : vector<8x1xf32> to vector<8x8xf32>
    %20 = arith.subf %16, %19 : vector<8x8xf32>
    %21 = math.exp %20 : vector<8x8xf32>
    %cst_12 = arith.constant dense<0.000000e+00> : vector<8xf32>
    %22 = vector.multi_reduction <add>, %21, %cst_12 [1] : vector<8x8xf32> to vector<8xf32>
    %23 = vector.shape_cast %22 : vector<8xf32> to vector<8x1xf32>
    %24 = tpu.reciprocal %23 {approx = true} : vector<8x1xf32> -> vector<8x1xf32>
    %25 = vector.broadcast %24 : vector<8x1xf32> to vector<8x8xf32>
    %26 = arith.mulf %21, %25 : vector<8x8xf32>
    %27 = arith.truncf %26 : vector<8x8xf32> to vector<8x8xbf16>
    %cst_13 = arith.constant dense<0.000000e+00> : vector<8x8xf32>
    %28 = tpu.matmul %27, %13, %cst_13 {dimension_numbers = #tpu.dot_dimension_numbers<[1], [0], [0], [1], [0, 0, 1, 1], [], []>} : vector<8x8xbf16>, vector<8x8xbf16>, vector<8x8xf32> -> vector<8x8xf32>
    %29 = arith.truncf %28 : vector<8x8xf32> to vector<8x8xbf16>
    %30 = vector.extract_strided_slice %5 {offsets = [0, 0], sizes = [8, 32], strides = [1, 1]} : vector<32x32xbf16> to vector<8x32xbf16>
    %cst_14 = arith.constant dense<0.000000e+00> : vector<8x32xf32>
    %31 = tpu.matmul %29, %30, %cst_14 {dimension_numbers = #tpu.dot_dimension_numbers<[1], [0], [0], [1], [0, 0, 1, 1], [], []>} : vector<8x8xbf16>, vector<8x32xbf16>, vector<8x32xf32> -> vector<8x32xf32>
    %32 = arith.addf %10, %31 : vector<8x32xf32>
    %33 = vector.extract_strided_slice %4 {offsets = [0, 8], sizes = [8, 8], strides = [1, 1]} : vector<8x96xbf16> to vector<8x8xbf16>
    %34 = vector.extract_strided_slice %4 {offsets = [0, 40], sizes = [8, 8], strides = [1, 1]} : vector<8x96xbf16> to vector<8x8xbf16>
    %35 = vector.extract_strided_slice %4 {offsets = [0, 72], sizes = [8, 8], strides = [1, 1]} : vector<8x96xbf16> to vector<8x8xbf16>
    %cst_15 = arith.constant dense<0.000000e+00> : vector<8x8xf32>
    %36 = tpu.matmul %33, %34, %cst_15 {dimension_numbers = #tpu.dot_dimension_numbers<[1], [1], [0], [0], [0, 0, 1, 0], [], []>} : vector<8x8xbf16>, vector<8x8xbf16>, vector<8x8xf32> -> vector<8x8xf32>
    %cst_16 = arith.constant -1.000000e+30 : f32
    %37 = vector.broadcast %cst_16 : f32 to vector<8x8xf32>
    %38 = arith.select %9, %36, %37 : vector<8x8xi1>, vector<8x8xf32>
    %cst_17 = arith.constant dense<0xFF800000> : vector<8xf32>
    %39 = vector.multi_reduction <maximumf>, %38, %cst_17 [1] : vector<8x8xf32> to vector<8xf32>
    %40 = vector.shape_cast %39 : vector<8xf32> to vector<8x1xf32>
    %41 = vector.broadcast %40 : vector<8x1xf32> to vector<8x8xf32>
    %42 = arith.subf %38, %41 : vector<8x8xf32>
    %43 = math.exp %42 : vector<8x8xf32>
    %cst_18 = arith.constant dense<0.000000e+00> : vector<8xf32>
    %44 = vector.multi_reduction <add>, %43, %cst_18 [1] : vector<8x8xf32> to vector<8xf32>
    %45 = vector.shape_cast %44 : vector<8xf32> to vector<8x1xf32>
    %46 = tpu.reciprocal %45 {approx = true} : vector<8x1xf32> -> vector<8x1xf32>
    %47 = vector.broadcast %46 : vector<8x1xf32> to vector<8x8xf32>
    %48 = arith.mulf %43, %47 : vector<8x8xf32>
    %49 = arith.truncf %48 : vector<8x8xf32> to vector<8x8xbf16>
    %cst_19 = arith.constant dense<0.000000e+00> : vector<8x8xf32>
    %50 = tpu.matmul %49, %35, %cst_19 {dimension_numbers = #tpu.dot_dimension_numbers<[1], [0], [0], [1], [0, 0, 1, 1], [], []>} : vector<8x8xbf16>, vector<8x8xbf16>, vector<8x8xf32> -> vector<8x8xf32>
    %51 = arith.truncf %50 : vector<8x8xf32> to vector<8x8xbf16>
    %52 = vector.extract_strided_slice %5 {offsets = [8, 0], sizes = [8, 32], strides = [1, 1]} : vector<32x32xbf16> to vector<8x32xbf16>
    %cst_20 = arith.constant dense<0.000000e+00> : vector<8x32xf32>
    %53 = tpu.matmul %51, %52, %cst_20 {dimension_numbers = #tpu.dot_dimension_numbers<[1], [0], [0], [1], [0, 0, 1, 1], [], []>} : vector<8x8xbf16>, vector<8x32xbf16>, vector<8x32xf32> -> vector<8x32xf32>
    %54 = arith.addf %32, %53 : vector<8x32xf32>
    %55 = vector.extract_strided_slice %4 {offsets = [0, 16], sizes = [8, 8], strides = [1, 1]} : vector<8x96xbf16> to vector<8x8xbf16>
    %56 = vector.extract_strided_slice %4 {offsets = [0, 48], sizes = [8, 8], strides = [1, 1]} : vector<8x96xbf16> to vector<8x8xbf16>
    %57 = vector.extract_strided_slice %4 {offsets = [0, 80], sizes = [8, 8], strides = [1, 1]} : vector<8x96xbf16> to vector<8x8xbf16>
    %cst_21 = arith.constant dense<0.000000e+00> : vector<8x8xf32>
    %58 = tpu.matmul %55, %56, %cst_21 {dimension_numbers = #tpu.dot_dimension_numbers<[1], [1], [0], [0], [0, 0, 1, 0], [], []>} : vector<8x8xbf16>, vector<8x8xbf16>, vector<8x8xf32> -> vector<8x8xf32>
    %cst_22 = arith.constant -1.000000e+30 : f32
    %59 = vector.broadcast %cst_22 : f32 to vector<8x8xf32>
    %60 = arith.select %9, %58, %59 : vector<8x8xi1>, vector<8x8xf32>
    %cst_23 = arith.constant dense<0xFF800000> : vector<8xf32>
    %61 = vector.multi_reduction <maximumf>, %60, %cst_23 [1] : vector<8x8xf32> to vector<8xf32>
    %62 = vector.shape_cast %61 : vector<8xf32> to vector<8x1xf32>
    %63 = vector.broadcast %62 : vector<8x1xf32> to vector<8x8xf32>
    %64 = arith.subf %60, %63 : vector<8x8xf32>
    %65 = math.exp %64 : vector<8x8xf32>
    %cst_24 = arith.constant dense<0.000000e+00> : vector<8xf32>
    %66 = vector.multi_reduction <add>, %65, %cst_24 [1] : vector<8x8xf32> to vector<8xf32>
    %67 = vector.shape_cast %66 : vector<8xf32> to vector<8x1xf32>
    %68 = tpu.reciprocal %67 {approx = true} : vector<8x1xf32> -> vector<8x1xf32>
    %69 = vector.broadcast %68 : vector<8x1xf32> to vector<8x8xf32>
    %70 = arith.mulf %65, %69 : vector<8x8xf32>
    %71 = arith.truncf %70 : vector<8x8xf32> to vector<8x8xbf16>
    %cst_25 = arith.constant dense<0.000000e+00> : vector<8x8xf32>
    %72 = tpu.matmul %71, %57, %cst_25 {dimension_numbers = #tpu.dot_dimension_numbers<[1], [0], [0], [1], [0, 0, 1, 1], [], []>} : vector<8x8xbf16>, vector<8x8xbf16>, vector<8x8xf32> -> vector<8x8xf32>
    %73 = arith.truncf %72 : vector<8x8xf32> to vector<8x8xbf16>
    %74 = vector.extract_strided_slice %5 {offsets = [16, 0], sizes = [8, 32], strides = [1, 1]} : vector<32x32xbf16> to vector<8x32xbf16>
    %cst_26 = arith.constant dense<0.000000e+00> : vector<8x32xf32>
    %75 = tpu.matmul %73, %74, %cst_26 {dimension_numbers = #tpu.dot_dimension_numbers<[1], [0], [0], [1], [0, 0, 1, 1], [], []>} : vector<8x8xbf16>, vector<8x32xbf16>, vector<8x32xf32> -> vector<8x32xf32>
    %76 = arith.addf %54, %75 : vector<8x32xf32>
    %77 = vector.extract_strided_slice %4 {offsets = [0, 24], sizes = [8, 8], strides = [1, 1]} : vector<8x96xbf16> to vector<8x8xbf16>
    %78 = vector.extract_strided_slice %4 {offsets = [0, 56], sizes = [8, 8], strides = [1, 1]} : vector<8x96xbf16> to vector<8x8xbf16>
    %79 = vector.extract_strided_slice %4 {offsets = [0, 88], sizes = [8, 8], strides = [1, 1]} : vector<8x96xbf16> to vector<8x8xbf16>
    %cst_27 = arith.constant dense<0.000000e+00> : vector<8x8xf32>
    %80 = tpu.matmul %77, %78, %cst_27 {dimension_numbers = #tpu.dot_dimension_numbers<[1], [1], [0], [0], [0, 0, 1, 0], [], []>} : vector<8x8xbf16>, vector<8x8xbf16>, vector<8x8xf32> -> vector<8x8xf32>
    %cst_28 = arith.constant -1.000000e+30 : f32
    %81 = vector.broadcast %cst_28 : f32 to vector<8x8xf32>
    %82 = arith.select %9, %80, %81 : vector<8x8xi1>, vector<8x8xf32>
    %cst_29 = arith.constant dense<0xFF800000> : vector<8xf32>
    %83 = vector.multi_reduction <maximumf>, %82, %cst_29 [1] : vector<8x8xf32> to vector<8xf32>
    %84 = vector.shape_cast %83 : vector<8xf32> to vector<8x1xf32>
    %85 = vector.broadcast %84 : vector<8x1xf32> to vector<8x8xf32>
    %86 = arith.subf %82, %85 : vector<8x8xf32>
    %87 = math.exp %86 : vector<8x8xf32>
    %cst_30 = arith.constant dense<0.000000e+00> : vector<8xf32>
    %88 = vector.multi_reduction <add>, %87, %cst_30 [1] : vector<8x8xf32> to vector<8xf32>
    %89 = vector.shape_cast %88 : vector<8xf32> to vector<8x1xf32>
    %90 = tpu.reciprocal %89 {approx = true} : vector<8x1xf32> -> vector<8x1xf32>
    %91 = vector.broadcast %90 : vector<8x1xf32> to vector<8x8xf32>
    %92 = arith.mulf %87, %91 : vector<8x8xf32>
    %93 = arith.truncf %92 : vector<8x8xf32> to vector<8x8xbf16>
    %cst_31 = arith.constant dense<0.000000e+00> : vector<8x8xf32>
    %94 = tpu.matmul %93, %79, %cst_31 {dimension_numbers = #tpu.dot_dimension_numbers<[1], [0], [0], [1], [0, 0, 1, 1], [], []>} : vector<8x8xbf16>, vector<8x8xbf16>, vector<8x8xf32> -> vector<8x8xf32>
    %95 = arith.truncf %94 : vector<8x8xf32> to vector<8x8xbf16>
    %96 = vector.extract_strided_slice %5 {offsets = [24, 0], sizes = [8, 32], strides = [1, 1]} : vector<32x32xbf16> to vector<8x32xbf16>
    %cst_32 = arith.constant dense<0.000000e+00> : vector<8x32xf32>
    %97 = tpu.matmul %95, %96, %cst_32 {dimension_numbers = #tpu.dot_dimension_numbers<[1], [0], [0], [1], [0, 0, 1, 1], [], []>} : vector<8x8xbf16>, vector<8x32xbf16>, vector<8x32xf32> -> vector<8x32xf32>
    %98 = arith.addf %76, %97 : vector<8x32xf32>
    %99 = vector.broadcast %6 : vector<1x32xf32> to vector<8x32xf32>
    %100 = arith.addf %98, %99 : vector<8x32xf32>
    %c0_33 = arith.constant 0 : index
    %c0_34 = arith.constant 0 : index
    %c0_35 = arith.constant 0 : index
    %101 = vector.load %arg5[%c0_33, %c0_34, %c0_35] : memref<1x8x32xf32, #tpu.memory_space<vmem>>, vector<1x8x32xf32>
    %102 = vector.shape_cast %101 : vector<1x8x32xf32> to vector<8x32xf32>
    %103 = vector.shape_cast %100 : vector<8x32xf32> to vector<1x8x32xf32>
    tpu.vector_store %arg5[%c0_33, %c0_34, %c0_35], %103 {strides = array<i32>} : memref<1x8x32xf32, #tpu.memory_space<vmem>>, vector<1x8x32xf32>,
    return
  }
  func.func @transform_0(%arg0: i32) -> (i32, i32, i32) {
    %c0_i32 = arith.constant 0 : i32
    %c0_i32_0 = arith.constant 0 : i32
    %c0_i32_1 = arith.constant 0 : i32
    return %arg0, %c0_i32, %c0_i32_0 : i32, i32, i32
  }
  func.func @transform_1(%arg0: i32) -> (i32, i32) {
    %c0_i32 = arith.constant 0 : i32
    %c0_i32_0 = arith.constant 0 : i32
    %c0_i32_1 = arith.constant 0 : i32
    return %c0_i32, %c0_i32_0 : i32, i32
  }
  func.func @transform_2(%arg0: i32) -> (i32, i32) {
    %c0_i32 = arith.constant 0 : i32
    %c0_i32_0 = arith.constant 0 : i32
    %c0_i32_1 = arith.constant 0 : i32
    return %c0_i32, %c0_i32_0 : i32, i32
  }
  func.func @transform_3(%arg0: i32) -> (i32, i32) {
    %c0_i32 = arith.constant 0 : i32
    %c0_i32_0 = arith.constant 0 : i32
    %c0_i32_1 = arith.constant 0 : i32
    return %c0_i32, %c0_i32_0 : i32, i32
  }
  func.func @transform_4(%arg0: i32) -> (i32, i32, i32) {
    %c0_i32 = arith.constant 0 : i32
    %c0_i32_0 = arith.constant 0 : i32
    %c0_i32_1 = arith.constant 0 : i32
    return %arg0, %c0_i32, %c0_i32_0 : i32, i32, i32
  }
}

module attributes {stable_mosaic.version = 11 : i64} {
  func.func @fused_mha_kernel(%arg0: i32, %arg1: memref<1x8x32xbf16, #tpu.memory_space<vmem>>, %arg2: memref<32x96xbf16, #tpu.memory_space<vmem>>, %arg3: memref<32x32xbf16, #tpu.memory_space<vmem>>, %arg4: memref<1x32xf32, #tpu.memory_space<vmem>>, %arg5: memref<1x8x32xf32, #tpu.memory_space<vmem>>) attributes {dimension_semantics = [#tpu.dimension_semantics<parallel>], iteration_bounds = array<i64: 2>, scalar_prefetch = 0 : i64, scratch_operands = 0 : i64, tpu.core_type = #tpu.core_type<tc>, window_params = [{transform_indices = @transform_0, window_bounds = array<i64: 1, 8, 32>}, {pipeline_mode = #tpu.pipeline_mode<synchronous>, transform_indices = @transform_1, window_bounds = array<i64: 32, 96>}, {pipeline_mode = #tpu.pipeline_mode<synchronous>, transform_indices = @transform_2, window_bounds = array<i64: 32, 32>}, {pipeline_mode = #tpu.pipeline_mode<synchronous>, transform_indices = @transform_3, window_bounds = array<i64: 1, 32>}, {transform_indices = @transform_4, window_bounds = array<i64: 1, 8, 32>}]} {
    %c0 = arith.constant 0 : index
    %c0_0 = arith.constant 0 : index
    %c0_1 = arith.constant 0 : index
    %0 = vector.load %arg1[%c0, %c0_0, %c0_1] : memref<1x8x32xbf16, #tpu.memory_space<vmem>>, vector<1x8x32xbf16>
    %1 = vector.shape_cast %0 : vector<1x8x32xbf16> to vector<8x32xbf16>
    %c0_2 = arith.constant 0 : index
    %c0_3 = arith.constant 0 : index
    %2 = vector.load %arg2[%c0_2, %c0_3] : memref<32x96xbf16, #tpu.memory_space<vmem>>, vector<32x96xbf16>
    %cst = arith.constant dense<0.000000e+00> : vector<8x96xf32>
    %3 = tpu.matmul %1, %2, %cst {dimension_numbers = #tpu.dot_dimension_numbers<[1], [0], [0], [1], [0, 0, 1, 1], [], []>} : vector<8x32xbf16>, vector<32x96xbf16>, vector<8x96xf32> -> vector<8x96xf32>
    %4 = arith.truncf %3 : vector<8x96xf32> to vector<8x96xbf16>
    %c0_4 = arith.constant 0 : index
    %c0_5 = arith.constant 0 : index
    %5 = vector.load %arg3[%c0_4, %c0_5] : memref<32x32xbf16, #tpu.memory_space<vmem>>, vector<32x32xbf16>
    %c0_6 = arith.constant 0 : index
    %c0_7 = arith.constant 0 : index
    %6 = vector.load %arg4[%c0_6, %c0_7] : memref<1x32xf32, #tpu.memory_space<vmem>>, vector<1x32xf32>
    %7 = tpu.iota {dimensions = array<i32: 0>} : vector<8x8xi32>
    %8 = tpu.iota {dimensions = array<i32: 1>} : vector<8x8xi32>
    %9 = arith.cmpi sge, %7, %8 : vector<8x8xi32>
    %cst_8 = arith.constant 0.000000e+00 : f32
    %10 = vector.broadcast %cst_8 : f32 to vector<8x32xf32>
    %11 = vector.extract_strided_slice %4 {offsets = [0, 0], sizes = [8, 8], strides = [1, 1]} : vector<8x96xbf16> to vector<8x8xbf16>
    %12 = vector.extract_strided_slice %4 {offsets = [0, 32], sizes = [8, 8], strides = [1, 1]} : vector<8x96xbf16> to vector<8x8xbf16>
    %13 = vector.extract_strided_slice %4 {offsets = [0, 64], sizes = [8, 8], strides = [1, 1]} : vector<8x96xbf16> to vector<8x8xbf16>
    %cst_9 = arith.constant dense<0.000000e+00> : vector<8x8xf32>
    %14 = tpu.matmul %11, %12, %cst_9 {dimension_numbers = #tpu.dot_dimension_numbers<[1], [1], [0], [0], [0, 0, 1, 0], [], []>} : vector<8x8xbf16>, vector<8x8xbf16>, vector<8x8xf32> -> vector<8x8xf32>
    %cst_10 = arith.constant -1.000000e+30 : f32
    %15 = vector.broadcast %cst_10 : f32 to vector<8x8xf32>
    %16 = arith.select %9, %14, %15 : vector<8x8xi1>, vector<8x8xf32>
    %cst_11 = arith.constant dense<0xFF800000> : vector<8xf32>
    %17 = vector.multi_reduction <maximumf>, %16, %cst_11 [1] : vector<8x8xf32> to vector<8xf32>
    %18 = vector.shape_cast %17 : vector<8xf32> to vector<8x1xf32>
    %19 = vector.broadcast %18 : vector<8x1xf32> to vector<8x8xf32>
    %20 = arith.subf %16, %19 : vector<8x8xf32>
    %21 = math.exp %20 : vector<8x8xf32>
    %cst_12 = arith.constant dense<0.000000e+00> : vector<8xf32>
    %22 = vector.multi_reduction <add>, %21, %cst_12 [1] : vector<8x8xf32> to vector<8xf32>
    %23 = vector.shape_cast %22 : vector<8xf32> to vector<8x1xf32>
    %24 = tpu.reciprocal %23 {approx = true} : vector<8x1xf32> -> vector<8x1xf32>
    %25 = vector.broadcast %24 : vector<8x1xf32> to vector<8x8xf32>
    %26 = arith.mulf %21, %25 : vector<8x8xf32>
    %27 = arith.truncf %26 : vector<8x8xf32> to vector<8x8xbf16>
    %cst_13 = arith.constant dense<0.000000e+00> : vector<8x8xf32>
    %28 = tpu.matmul %27, %13, %cst_13 {dimension_numbers = #tpu.dot_dimension_numbers<[1], [0], [0], [1], [0, 0, 1, 1], [], []>} : vector<8x8xbf16>, vector<8x8xbf16>, vector<8x8xf32> -> vector<8x8xf32>
    %29 = arith.truncf %28 : vector<8x8xf32> to vector<8x8xbf16>
    %30 = vector.extract_strided_slice %5 {offsets = [0, 0], sizes = [8, 32], strides = [1, 1]} : vector<32x32xbf16> to vector<8x32xbf16>
    %cst_14 = arith.constant dense<0.000000e+00> : vector<8x32xf32>
    %31 = tpu.matmul %29, %30, %cst_14 {dimension_numbers = #tpu.dot_dimension_numbers<[1], [0], [0], [1], [0, 0, 1, 1], [], []>} : vector<8x8xbf16>, vector<8x32xbf16>, vector<8x32xf32> -> vector<8x32xf32>
    %32 = arith.addf %10, %31 : vector<8x32xf32>
    %33 = vector.extract_strided_slice %4 {offsets = [0, 8], sizes = [8, 8], strides = [1, 1]} : vector<8x96xbf16> to vector<8x8xbf16>
    %34 = vector.extract_strided_slice %4 {offsets = [0, 40], sizes = [8, 8], strides = [1, 1]} : vector<8x96xbf16> to vector<8x8xbf16>
    %35 = vector.extract_strided_slice %4 {offsets = [0, 72], sizes = [8, 8], strides = [1, 1]} : vector<8x96xbf16> to vector<8x8xbf16>
    %cst_15 = arith.constant dense<0.000000e+00> : vector<8x8xf32>
    %36 = tpu.matmul %33, %34, %cst_15 {dimension_numbers = #tpu.dot_dimension_numbers<[1], [1], [0], [0], [0, 0, 1, 0], [], []>} : vector<8x8xbf16>, vector<8x8xbf16>, vector<8x8xf32> -> vector<8x8xf32>
    %cst_16 = arith.constant -1.000000e+30 : f32
    %37 = vector.broadcast %cst_16 : f32 to vector<8x8xf32>
    %38 = arith.select %9, %36, %37 : vector<8x8xi1>, vector<8x8xf32>
    %cst_17 = arith.constant dense<0xFF800000> : vector<8xf32>
    %39 = vector.multi_reduction <maximumf>, %38, %cst_17 [1] : vector<8x8xf32> to vector<8xf32>
    %40 = vector.shape_cast %39 : vector<8xf32> to vector<8x1xf32>
    %41 = vector.broadcast %40 : vector<8x1xf32> to vector<8x8xf32>
    %42 = arith.subf %38, %41 : vector<8x8xf32>
    %43 = math.exp %42 : vector<8x8xf32>
    %cst_18 = arith.constant dense<0.000000e+00> : vector<8xf32>
    %44 = vector.multi_reduction <add>, %43, %cst_18 [1] : vector<8x8xf32> to vector<8xf32>
    %45 = vector.shape_cast %44 : vector<8xf32> to vector<8x1xf32>
    %46 = tpu.reciprocal %45 {approx = true} : vector<8x1xf32> -> vector<8x1xf32>
    %47 = vector.broadcast %46 : vector<8x1xf32> to vector<8x8xf32>
    %48 = arith.mulf %43, %47 : vector<8x8xf32>
    %49 = arith.truncf %48 : vector<8x8xf32> to vector<8x8xbf16>
    %cst_19 = arith.constant dense<0.000000e+00> : vector<8x8xf32>
    %50 = tpu.matmul %49, %35, %cst_19 {dimension_numbers = #tpu.dot_dimension_numbers<[1], [0], [0], [1], [0, 0, 1, 1], [], []>} : vector<8x8xbf16>, vector<8x8xbf16>, vector<8x8xf32> -> vector<8x8xf32>
    %51 = arith.truncf %50 : vector<8x8xf32> to vector<8x8xbf16>
    %52 = vector.extract_strided_slice %5 {offsets = [8, 0], sizes = [8, 32], strides = [1, 1]} : vector<32x32xbf16> to vector<8x32xbf16>
    %cst_20 = arith.constant dense<0.000000e+00> : vector<8x32xf32>
    %53 = tpu.matmul %51, %52, %cst_20 {dimension_numbers = #tpu.dot_dimension_numbers<[1], [0], [0], [1], [0, 0, 1, 1], [], []>} : vector<8x8xbf16>, vector<8x32xbf16>, vector<8x32xf32> -> vector<8x32xf32>
    %54 = arith.addf %32, %53 : vector<8x32xf32>
    %55 = vector.extract_strided_slice %4 {offsets = [0, 16], sizes = [8, 8], strides = [1, 1]} : vector<8x96xbf16> to vector<8x8xbf16>
    %56 = vector.extract_strided_slice %4 {offsets = [0, 48], sizes = [8, 8], strides = [1, 1]} : vector<8x96xbf16> to vector<8x8xbf16>
    %57 = vector.extract_strided_slice %4 {offsets = [0, 80], sizes = [8, 8], strides = [1, 1]} : vector<8x96xbf16> to vector<8x8xbf16>
    %cst_21 = arith.constant dense<0.000000e+00> : vector<8x8xf32>
    %58 = tpu.matmul %55, %56, %cst_21 {dimension_numbers = #tpu.dot_dimension_numbers<[1], [1], [0], [0], [0, 0, 1, 0], [], []>} : vector<8x8xbf16>, vector<8x8xbf16>, vector<8x8xf32> -> vector<8x8xf32>
    %cst_22 = arith.constant -1.000000e+30 : f32
    %59 = vector.broadcast %cst_22 : f32 to vector<8x8xf32>
    %60 = arith.select %9, %58, %59 : vector<8x8xi1>, vector<8x8xf32>
    %cst_23 = arith.constant dense<0xFF800000> : vector<8xf32>
    %61 = vector.multi_reduction <maximumf>, %60, %cst_23 [1] : vector<8x8xf32> to vector<8xf32>
    %62 = vector.shape_cast %61 : vector<8xf32> to vector<8x1xf32>
    %63 = vector.broadcast %62 : vector<8x1xf32> to vector<8x8xf32>
    %64 = arith.subf %60, %63 : vector<8x8xf32>
    %65 = math.exp %64 : vector<8x8xf32>
    %cst_24 = arith.constant dense<0.000000e+00> : vector<8xf32>
    %66 = vector.multi_reduction <add>, %65, %cst_24 [1] : vector<8x8xf32> to vector<8xf32>
    %67 = vector.shape_cast %66 : vector<8xf32> to vector<8x1xf32>
    %68 = tpu.reciprocal %67 {approx = true} : vector<8x1xf32> -> vector<8x1xf32>
    %69 = vector.broadcast %68 : vector<8x1xf32> to vector<8x8xf32>
    %70 = arith.mulf %65, %69 : vector<8x8xf32>
    %71 = arith.truncf %70 : vector<8x8xf32> to vector<8x8xbf16>
    %cst_25 = arith.constant dense<0.000000e+00> : vector<8x8xf32>
    %72 = tpu.matmul %71, %57, %cst_25 {dimension_numbers = #tpu.dot_dimension_numbers<[1], [0], [0], [1], [0, 0, 1, 1], [], []>} : vector<8x8xbf16>, vector<8x8xbf16>, vector<8x8xf32> -> vector<8x8xf32>
    %73 = arith.truncf %72 : vector<8x8xf32> to vector<8x8xbf16>
    %74 = vector.extract_strided_slice %5 {offsets = [16, 0], sizes = [8, 32], strides = [1, 1]} : vector<32x32xbf16> to vector<8x32xbf16>
    %cst_26 = arith.constant dense<0.000000e+00> : vector<8x32xf32>
    %75 = tpu.matmul %73, %74, %cst_26 {dimension_numbers = #tpu.dot_dimension_numbers<[1], [0], [0], [1], [0, 0, 1, 1], [], []>} : vector<8x8xbf16>, vector<8x32xbf16>, vector<8x32xf32> -> vector<8x32xf32>
    %76 = arith.addf %54, %75 : vector<8x32xf32>
    %77 = vector.extract_strided_slice %4 {offsets = [0, 24], sizes = [8, 8], strides = [1, 1]} : vector<8x96xbf16> to vector<8x8xbf16>
    %78 = vector.extract_strided_slice %4 {offsets = [0, 56], sizes = [8, 8], strides = [1, 1]} : vector<8x96xbf16> to vector<8x8xbf16>
    %79 = vector.extract_strided_slice %4 {offsets = [0, 88], sizes = [8, 8], strides = [1, 1]} : vector<8x96xbf16> to vector<8x8xbf16>
    %cst_27 = arith.constant dense<0.000000e+00> : vector<8x8xf32>
    %80 = tpu.matmul %77, %78, %cst_27 {dimension_numbers = #tpu.dot_dimension_numbers<[1], [1], [0], [0], [0, 0, 1, 0], [], []>} : vector<8x8xbf16>, vector<8x8xbf16>, vector<8x8xf32> -> vector<8x8xf32>
    %cst_28 = arith.constant -1.000000e+30 : f32
    %81 = vector.broadcast %cst_28 : f32 to vector<8x8xf32>
    %82 = arith.select %9, %80, %81 : vector<8x8xi1>, vector<8x8xf32>
    %cst_29 = arith.constant dense<0xFF800000> : vector<8xf32>
    %83 = vector.multi_reduction <maximumf>, %82, %cst_29 [1] : vector<8x8xf32> to vector<8xf32>
    %84 = vector.shape_cast %83 : vector<8xf32> to vector<8x1xf32>
    %85 = vector.broadcast %84 : vector<8x1xf32> to vector<8x8xf32>
    %86 = arith.subf %82, %85 : vector<8x8xf32>
    %87 = math.exp %86 : vector<8x8xf32>
    %cst_30 = arith.constant dense<0.000000e+00> : vector<8xf32>
    %88 = vector.multi_reduction <add>, %87, %cst_30 [1] : vector<8x8xf32> to vector<8xf32>
    %89 = vector.shape_cast %88 : vector<8xf32> to vector<8x1xf32>
    %90 = tpu.reciprocal %89 {approx = true} : vector<8x1xf32> -> vector<8x1xf32>
    %91 = vector.broadcast %90 : vector<8x1xf32> to vector<8x8xf32>
    %92 = arith.mulf %87, %91 : vector<8x8xf32>
    %93 = arith.truncf %92 : vector<8x8xf32> to vector<8x8xbf16>
    %cst_31 = arith.constant dense<0.000000e+00> : vector<8x8xf32>
    %94 = tpu.matmul %93, %79, %cst_31 {dimension_numbers = #tpu.dot_dimension_numbers<[1], [0], [0], [1], [0, 0, 1, 1], [], []>} : vector<8x8xbf16>, vector<8x8xbf16>, vector<8x8xf32> -> vector<8x8xf32>
    %95 = arith.truncf %94 : vector<8x8xf32> to vector<8x8xbf16>
    %96 = vector.extract_strided_slice %5 {offsets = [24, 0], sizes = [8, 32], strides = [1, 1]} : vector<32x32xbf16> to vector<8x32xbf16>
    %cst_32 = arith.constant dense<0.000000e+00> : vector<8x32xf32>
    %97 = tpu.matmul %95, %96, %cst_32 {dimension_numbers = #tpu.dot_dimension_numbers<[1], [0], [0], [1], [0, 0, 1, 1], [], []>} : vector<8x8xbf16>, vector<8x32xbf16>, vector<8x32xf32> -> vector<8x32xf32>
    %98 = arith.addf %76, %97 : vector<8x32xf32>
    %99 = vector.broadcast %6 : vector<1x32xf32> to vector<8x32xf32>
    %100 = arith.addf %98, %99 : vector<8x32xf32>
    %c0_33 = arith.constant 0 : index
    %c0_34 = arith.constant 0 : index
    %c0_35 = arith.constant 0 : index
    %101 = vector.load %arg5[%c0_33, %c0_34, %c0_35] : memref<1x8x32xf32, #tpu.memory_space<vmem>>, vector<1x8x32xf32>
    %102 = vector.shape_cast %101 : vector<1x8x32xf32> to vector<8x32xf32>
    %103 = vector.shape_cast %100 : vector<8x32xf32> to vector<1x8x32xf32>
    tpu.vector_store %arg5[%c0_33, %c0_34, %c0_35], %103 {strides = array<i32>} : memref<1x8x32xf32, #tpu.memory_space<vmem>>, vector<1x8x32xf32>,
    return
  }
  func.func @transform_0(%arg0: i32) -> (i32, i32, i32) {
    %c0_i32 = arith.constant 0 : i32
    %c0_i32_0 = arith.constant 0 : i32
    %c0_i32_1 = arith.constant 0 : i32
    return %arg0, %c0_i32, %c0_i32_0 : i32, i32, i32
  }
  func.func @transform_1(%arg0: i32) -> (i32, i32) {
    %c0_i32 = arith.constant 0 : i32
    %c0_i32_0 = arith.constant 0 : i32
    %c0_i32_1 = arith.constant 0 : i32
    return %c0_i32, %c0_i32_0 : i32, i32
  }
  func.func @transform_2(%arg0: i32) -> (i32, i32) {
    %c0_i32 = arith.constant 0 : i32
    %c0_i32_0 = arith.constant 0 : i32
    %c0_i32_1 = arith.constant 0 : i32
    return %c0_i32, %c0_i32_0 : i32, i32
  }
  func.func @transform_3(%arg0: i32) -> (i32, i32) {
    %c0_i32 = arith.constant 0 : i32
    %c0_i32_0 = arith.constant 0 : i32
    %c0_i32_1 = arith.constant 0 : i32
    return %c0_i32, %c0_i32_0 : i32, i32
  }
  func.func @transform_4(%arg0: i32) -> (i32, i32, i32) {
    %c0_i32 = arith.constant 0 : i32
    %c0_i32_0 = arith.constant 0 : i32
    %c0_i32_1 = arith.constant 0 : i32
    return %arg0, %c0_i32, %c0_i32_0 : i32, i32, i32
  }
}

</mosaic_0001>

<bundles_post_ra>
// kernel: tpu_custom_call.1
= control target key start
LH: loop header
LB: loop body
LE: loop exit
PB: predicated region body
PF: predicated region fallthrough
CT: control target
= control target key end

     0   :  { %9 = vsyncpa [#allocation3], 0  ;;  %s1784_s0 = inlined_call_operand.hbm [shape: bf16[2,8,32], index: 0, kind: input, shape index: {}]   ;;  %s1785_s1 = inlined_call_operand.hbm [shape: bf16[32,96], index: 1, kind: input, shape index: {}]   ;;  %s1786_s2 = inlined_call_operand.hbm [shape: bf16[32,32], index: 2, kind: input, shape index: {}]   ;;  %s1787_s3 = inlined_call_operand.vmem [shape: f32[1,32], index: 3, kind: input, shape index: {}]   ;;  %s1788_s4 = inlined_call_operand.hbm [shape: f32[2,8,32], index: 4, kind: output, shape index: {}]  }
   0x1   :  { %11 = vsyncpa [#allocation3 + $0x1], 0 }
   0x2   :  { %12 = vsyncpa [#allocation6], 0 }
   0x3   :  { %13 = vsyncpa [#allocation4], 0 }
   0x4   :  { %15 = vsyncpa [#allocation4 + $0x1], 0  ;;  %s1494_s15 = smov 0   ;;  %s1496_s16 = smov 0  }
   0x5   :  { %s1498_s17 = smov 0   ;;  %s1500_s18 = smov 0  }
   0x6 LB: > { %s1515_s19 = sadd.s32 4294967295, %s1448_s18   ;;  %s1061_s20 = sadd.s32 4294967294, %s1448_s18   ;;  %s1448_s18 = sphi %s1500_s18, %s1810_s18   ;;  %s1444_s17 = sphi %s1498_s17, %s1809_s17   ;;  %s1440_s16 = sphi %s1496_s16, %s1808_s16   ;;  %s1436_s15 = sphi %s1494_s15, %s1807_s15  }
   0x7   : > { %p41_p0 = scmp.ne.s32.totalorder %s1440_s16, %s1436_s15  ;;  %p1789_p1 = scmp.eq.s32.totalorder %s1515_s19, 0 }
   0x8   : > { %p134_p3 = scmp.eq.s32.totalorder %s1061_s20, 1  ;;  %p1062_p5 = scmp.ge.s32.totalorder %s1448_s18, 1 }
   0x9   : > { %p1524_p4 = por %p1789_p1, %p41_p0  ;;  %p141_p7 = scmp.lt.s32.totalorder %s1448_s18, 3 }
   0xa   : > { %p1529_p6 = por %p134_p3, %p41_p0  ;;  %s1450_s24 = smov [#allocation5]  }
   0xb   : > { %s1793_s21 = scalar_select %p1524_p4, 1, 0 }
   0xc   : > { %s1794_s22 = scalar_select %p1529_p6, 1, 0 }
   0xd   : > { %p1534_p8 = pnand %p1062_p5, %p141_p7  ;;  %s153_s25 = sshll.u32 %s1450_s24, 4  ;;  %s154_s25 = int_to_ptr.vmem [resolvable:$true] %s153_s25 }
   0xe   : > { %s1451_s27 = smov [#allocation7]   ;;  %s1311_s29 = scalar_lea.vmem %s154_s25, 256 }
   0xf   : > { %s1795_s23 = scalar_select %p1534_p8, 1, 0 }
  0x10   : > { %p1212_p9 = pneg %p1534_p8  ;;  %s166_s28 = sshll.u32 %s1451_s27, 4  ;;  %s167_s28 = int_to_ptr.vmem [resolvable:$true] %s166_s28 }
  0x11   : > { %p1312_p13 = scmp.ne.s32.totalorder %s154_s25, %s1311_s29  ;;  %p1319_p5 = scmp.lt.s32.totalorder %s154_s25, %s154_s25 }
  0x12   : > { %p1543_p11 = pnand %p1212_p9, %p1789_p1  ;;  %p1320_p7 = scmp.lt.s32.totalorder %s1311_s29, %s1311_s29 }
  0x14   : > { %p1302_p12 = pneg %p1543_p11  ;;  %p1321_p10 = por %p1320_p7, %p1319_p5 }
  0x16   : > { %p1314_p0 = pnand %p1312_p13, %p1302_p12 }
  0x18   : > { %p1315_p3 = pneg %p1314_p0 }
  0x1a   : > { %p1322_p9 = pnand %p1321_p10, %p1315_p3 }
  0x1c   : > { %1325 = shalt.err (!%p1322_p9)
}
  0x1d   : > { %s1452_s30 = smov 64   ;;  %s1453_s5 = smov 4  }
  0x1e   : > { %1215 = dma.hbm_to_vmem [thread:$0]  (!%p1543_p11), %s1785_s1, 256, %s154_s25, [#allocation6], %s1452_s30, %s1452_s30, %s1453_s5  }
  0x1f   : > { %s1337_s8 = scalar_lea.vmem %s167_s28, 256  ;;  %p1345_p2 = scmp.lt.s32.totalorder %s167_s28, %s167_s28 }
  0x20   : > { %p1338_p1 = scmp.ne.s32.totalorder %s167_s28, %s1337_s8  ;;  %p1346_p6 = scmp.lt.s32.totalorder %s1337_s8, %s1337_s8 }
  0x22   : > { %p1340_p13 = pnand %p1338_p1, %p1302_p12  ;;  %p1347_p5 = por %p1346_p6, %p1345_p2 }
  0x24   : > { %p1341_p0 = pneg %p1340_p13 }
  0x26   : > { %p1348_p10 = pnand %p1347_p5, %p1341_p0 }
  0x28   : > { %1351 = shalt.err (!%p1348_p10)
}
  0x29   : > { %1218 = dma.hbm_to_vmem [thread:$0]  (!%p1543_p11), %s1786_s2, 256, %s167_s28, [#allocation6], %s1452_s30, %s1452_s30, %s1453_s5  }
  0x2a   : > { %s1566_s11 = sadd.s32 1, %s1448_s18   ;;  %s28_s12 = sadd.s32 1, %s1444_s17 }
  0x2b   : > { %s25_s13 = ssub.s32 %s1448_s18, %s1566_s11  ;;  %p35_p1 = scmp.ne.s32.totalorder %s1444_s17, %s1440_s16 }
  0x2c   : > { %p26_p2 = scmp.eq.s32.totalorder %s25_s13, 0  ;;  %p36_p6 = scmp.eq.s32.totalorder %s1448_s18, 0 }
  0x2d   : > { %p1797_p12 = scmp.eq.s32.totalorder %s1515_s19, 1  ;;  %p1229_p7 = scmp.lt.s32.totalorder %s1448_s18, 2 }
  0x2e   : > { %s1582_s20 = scalar_select %p26_p2, %s1444_s17, %s28_s12  }
  0x2f   : > { %p1576_p3 = por %p1797_p12, %p35_p1  ;;  %p37_p9 = por %p36_p6, %p35_p1 }
  0x30   : > { %s183_s24 = sand.u32 1, %s1444_s17   ;;  %s1067_s26 = sshll.u32 %s1448_s18, 6 }
  0x31   : > { %s1798_s14 = scalar_select %p1576_p3, 1, 0 }
  0x32   : > { %s1066_s25 = sshll.u32 %s183_s24, 2  ;;  %s1589_s29 = scalar_lea.hbm %s1784_s0, %s1067_s26 }
  0x33   : > { %s187_s30 = scalar_lea.vmem [#allocation2], %s1066_s25  ;;  %p1591_p11 = pnand %p1229_p7, %p37_p9 }
  0x34   : > { %s194_s5 = sshll.u32 %s187_s30, 4  ;;  %s184_s7 = scalar_lea.sflag [#allocation3], %s183_s24  ;;  %s195_s5 = int_to_ptr.vmem [resolvable:$true] %s194_s5 }
  0x35   : > { %s1352_s8 = scalar_lea.hbm %s1589_s29, 64  ;;  %p1354_p0 = pneg %p1591_p11 }
  0x36   : > { %p1353_p13 = scmp.ne.s32.totalorder %s1589_s29, %s1352_s8  ;;  %s1357_s12 = scalar_lea.hbm %s1784_s0, 128 }
  0x37   : > { %p1358_p1 = scmp.lt.s32.totalorder %s1589_s29, %s1784_s0  ;;  %p1359_p2 = scmp.lt.s32.totalorder %s1357_s12, %s1352_s8 }
  0x38   : > { %p1355_p5 = pnand %p1354_p0, %p1353_p13 }
  0x39   : > { %p1360_p6 = por %p1359_p2, %p1358_p1 }
  0x3a   : > { %p1356_p10 = pneg %p1355_p5 }
  0x3c   : > { %p1361_p12 = pnand %p1360_p6, %p1356_p10 }
  0x3e   : > { %1364 = shalt.err (!%p1361_p12)
}
  0x3f   : > { %s1365_s26 = scalar_lea.vmem %s195_s5, 64  ;;  %s1454_s24 = smov [#allocation2]  }
  0x40   : > { %p1366_p7 = scmp.ne.s32.totalorder %s195_s5, %s1365_s26  ;;  %s1370_s27 = sshll.u32 %s1454_s24, 4  ;;  %s1371_s27 = int_to_ptr.vmem [resolvable:$false] %s1370_s27 }
  0x41   : > { %s1372_s28 = scalar_lea.vmem %s1371_s27, 128  ;;  %p1373_p13 = scmp.lt.s32.totalorder %s195_s5, %s1371_s27 }
  0x42   : > { %p1368_p9 = pnand %p1366_p7, %p1354_p0  ;;  %p1374_p5 = scmp.lt.s32.totalorder %s1372_s28, %s1365_s26 }
  0x44   : > { %p1369_p3 = pneg %p1368_p9  ;;  %p1375_p4 = por %p1374_p5, %p1373_p13 }
  0x46   : > { %p1376_p8 = pnand %p1375_p4, %p1369_p3 }
  0x48   : > { %1379 = shalt.err (!%p1376_p8)
}
  0x49   : > { %1222 = dma.hbm_to_vmem [thread:$0]  (!%p1591_p11), %s1589_s29, 64, %s195_s5, %s184_s7  }
  0x4a   : > { %p1800_p10 = scmp.ne.s32.totalorder %s1795_s23, 0 }
  0x4b   : > { %s1612_s30 = sand.u32 (!%p1800_p10), 1, %s1440_s16   ;;  %p1801_p0 = scmp.ne.s32.totalorder (!%p1800_p10), %s1793_s21, 0 }
  0x4c   : > { %203 = sbr.rel (%p1800_p10) target bundleno = 2562 (0xa02), region = 36  ;;  %s1069_s8 = sshll.u32 (!%p1800_p10), %s1612_s30, 2 }
  0x4d   : > { %s206_s9 = scalar_lea.sflag (!%p1800_p10), [#allocation3], %s1612_s30  ;;  %s209_s10 = scalar_lea.vmem (!%p1800_p10), [#allocation2], %s1069_s8 }
  0x51   : > { %1423 = dma.done.wait (%p1801_p0), %s206_s9, 64  }
  0x52   : > { %1425 = vsyncadd (%p1801_p0), %s206_s9, 4294967232  ;;  %p1802_p4 = scmp.eq.s32.totalorder %s1515_s19, 0 }
  0x54   : > { %1427 = dma.done.wait (%p1802_p4), [#allocation6], 512   ;;  %p1803_p8 = pmov %p1802_p4 }
  0x55   : > { %v1455_v0 = vmov 0.0   ;;  %vm1456_vm0 = vmmov 0   ;;  %v1282_v1 = vld [vmem:[#allocation5 + $0x8] sm:$0xff]   ;;  %v1283_v2 = vld [vmem:[#allocation5] sm:$0xff]   ;;  %v243_v3 = vld [vmem:[%s209_s10] sm:$0xf]  ;;  %v310_v14 = vlaneseq }
  0x56   : > { %1429 = vsyncadd (%p1803_p8), [#allocation6], 4294966784  ;;  %1120 = vmatprep.subr.bf16.mxu0 %v1455_v0  ;;  %1124 = vmatprep.mubr.msk.bf16.mxu0 %vm1456_vm0, %v1455_v0  ;;  %vm260_vm1 = vcmask 261120   ;;  %s1457_s21 = smov 120   ;;  %s1458_s23 = smov 96   ;;  %vm318_vm2 = vcmask 64512  }
  0x57   : > { %1128 = vmatprep.subr.bf16.mxu1 %v1455_v0  ;;  %1130 = vmatprep.mubr.msk.bf16.mxu1 %vm1456_vm0, %v1455_v0  ;;  %s1459_s29 = smov 88   ;;  %v1651_v15 = vshrl.u32 %v310_v14, 7  ;;  %v1653_v16 = vand.u32 127, %v310_v14  ;;  %s1460_s5 = smov 64   ;;  %vm383_vm4 = vcmask 1043456  }
  0x58   : > { %1121 = vmatpush3.bf16.msra.mxu0 %v1282_v1  ;;  %s1461_s6 = smov 56   ;;  %s1462_s7 = smov 112   ;;  %v305_v51 = vld [vmem:[#allocation7] sm:$0xf]  ;;  %v306_v53 = vld [vmem:[#allocation7 + $0x4] sm:$0xf] }
  0x59   : > { %1122 = vmatprep.subr.bf16.mxu0 %v1455_v0  ;;  %vm314_vm3 = vcmp.ge.s32.totalorder %v1651_v15, %v1653_v16  ;;  %s1463_s12 = smov 80   ;;  %v590_v52 = vsel %vm383_vm4, %v305_v51, 0  ;;  %v544_v54 = vsel %vm383_vm4, %v306_v53, 0  ;;  %s1464_s13 = smov 72  }
  0x5a   : > { %s1465_s25 = smov 104   ;;  %s1466_s26 = smov 48  }
  0x5b   : > { %s1467_s24 = smov 40   ;;  %s1072_s27 = sshll.u32 %s1612_s30, 3 }
  0x5c   : > { %1123 = vmatpush3.bf16.msra.mxu0 %v1283_v2  ;;  %s1090_s9 = sshll.u32 %s1515_s19, 7  ;;  %s241_s10 = scalar_lea.vmem [#allocation8], %s1072_s27 }
  0x5d   : > { %1134 = vmatprep.subr.bf16.mxu0 %v1455_v0  ;;  %s959_s19 = scalar_lea.sflag [#allocation4], %s1612_s30  ;;  %p1804_p11 = scmp.ne.s32.totalorder %s1798_s14, 0 }
  0x5f   : > { %1125 = vmatmul.mubr.msk.bf16.vlgmr.msra.gmra.mxu0 %vm260_vm1, %v243_v3 }
  0x60   : > { %1136 = vmatprep.mubr.msk.bf16.mxu0 %vm1456_vm0, %v1455_v0 }
 0x11f   : > { %v298_v4 = vpop.f32.mrf.mxu0 }
 0x120   : > { %v1635_v5 = vpack.c.bf16 %v298_v4, %v298_v4 }
 0x121   : > { %v1126_v6 = vpop.f32.mrf.mxu0 }
 0x122   : > { %428 = vrot.lane.b32.xlu1 %v1635_v5, %s1457_s21  ;;  %316 = vrot.lane.b32.xlu0 %v1635_v5, %s1458_s23  ;;  %s972_s21 = sshll.u32 %s241_s10, 4  ;;  %s1742_s21 = int_to_ptr.vmem [resolvable:$true] %s972_s21 }
 0x123   : > { %v301_v7 = vpop.f32.mrf.mxu0 }
 0x125   : > { %v1127_v8 = vpop.f32.mrf.mxu0 }
 0x126   : > { %430 = vrot.lane.b32.xlu0 %v1635_v5, %s1459_s29 }
 0x194   : > { %v317_v9 = vpop.permute.xlu0 %316  ;;  %v429_v13 = vpop.permute.xlu1 %428 }
 0x195   : > { %v323_v10 = vsel %vm318_vm2, %v317_v9, 0 }
 0x196   : > { %1129 = vmatpush3.bf16.xpose.msra.mxu1 %v323_v10 }
 0x197   : > { %1140 = vmatprep.subr.bf16.mxu1 %v1455_v0 }
 0x198   : > { %v431_v11 = vpop.permute.xlu0 %430 }
 0x199   : > { %v436_v12 = vsel %vm318_vm2, %v431_v11, 0 }
 0x19d   : > { %1131 = vmatmul.mubr.msk.bf16.vlgmr.msra.gmra.mxu1 %vm318_vm2, %v1635_v5 }
 0x19e   : > { %1141 = vmatpush3.bf16.xpose.msra.mxu1 %v436_v12  ;;  %1142 = vmatprep.mubr.msk.bf16.mxu1 %vm1456_vm0, %v1455_v0 }
 0x19f   : > { %1152 = vmatprep.subr.bf16.mxu1 %v1455_v0 }
 0x1a5   : > { %1143 = vmatmul.mubr.msk.bf16.vlgmr.msra.gmra.mxu1 %vm318_vm2, %v429_v13 }
 0x1a6   : > { %1154 = vmatprep.mubr.msk.bf16.mxu1 %vm1456_vm0, %v1455_v0  ;;  %1153 = vmatpush3.bf16.msra.mxu1 %v544_v54 }
 0x1a7   : > { %1164 = vmatprep.subr.bf16.mxu1 %v1455_v0 }
 0x25d   : > { %v359_v17 = vpop.f32.mrf.mxu1 }
 0x25e   : > { %v365_v18 = vsel %vm314_vm3, %v359_v17, -1e+30 }
 0x25f   : > { %v1132_v19 = vpop.f32.mrf.mxu1  ;;  %v366_v20 = vsel %vm318_vm2, %v365_v18, -inf }
 0x260   : > { %367 = vmax.xlane.f32.xlu1 %v366_v20 }
 0x261   : > { %v362_v21 = vpop.f32.mrf.mxu1 }
 0x263   : > { %v1133_v22 = vpop.f32.mrf.mxu1 }
 0x265   : > { %v472_v23 = vpop.f32.mrf.mxu1 }
 0x266   : > { %v478_v24 = vsel %vm314_vm3, %v472_v23, -1e+30 }
 0x267   : > { %v1144_v25 = vpop.f32.mrf.mxu1  ;;  %v479_v26 = vsel %vm318_vm2, %v478_v24, -inf }
 0x268   : > { %480 = vmax.xlane.f32.xlu0 %v479_v26 }
 0x269   : > { %v475_v27 = vpop.f32.mrf.mxu1 }
 0x26b   : > { %v1145_v28 = vpop.f32.mrf.mxu1 }
 0x2e9   : > { %v368_v29 = vpop.xlane.xlu1 %367 }
 0x2ea   : > { %v369_v30 = vsub.f32 %v365_v18, %v368_v29 }
 0x2ec   : > { %v370_v31 = vmul.f32 1.442695, %v369_v30 }
 0x2ee   : > { %1284 = vpow2.f32 %v370_v31 }
 0x2f1   : > { %v481_v32 = vpop.xlane.xlu0 %480 }
 0x2f2   : > { %v482_v33 = vsub.f32 %v478_v24, %v481_v32 }
 0x2f4   : > { %v483_v34 = vmul.f32 1.442695, %v482_v33 }
 0x2f6   : > { %1286 = vpow2.f32 %v483_v34 }
 0x2fb   : > { %v1285_v35 = vpop.eup %1284 }
 0x2fc   : > { %v372_v36 = vsel %vm318_vm2, %v1285_v35, 0.0 }
 0x2fd   : > { %373 = vadd.xlane.f32.xlu0 %v372_v36 }
 0x303   : > { %v1287_v37 = vpop.eup %1286 }
 0x304   : > { %v485_v38 = vsel %vm318_vm2, %v1287_v37, 0.0 }
 0x305   : > { %486 = vadd.xlane.f32.xlu1 %v485_v38 }
 0x313   : > { %378 = vrot.lane.b32.xlu0 %v1635_v5, %s1460_s5  ;;  %s1740_s5 = scalar_lea.hbm %s1788_s4, %s1090_s9 }
 0x316   : > { %491 = vrot.lane.b32.xlu1 %v1635_v5, %s1461_s6  ;;  %s1380_s6 = scalar_lea.vmem %s1742_s21, 128 }
 0x317   : > { %632 = vrot.lane.b32.xlu0 %v1635_v5, %s1462_s7  ;;  %p1381_p3 = scmp.ne.s32.totalorder %s1742_s21, %s1380_s6  ;;  %s1468_s7 = smov [#allocation8]  }
 0x319   : > { %p1382_p1 = pnand %p1381_p3, %p1804_p11 }
 0x31a   : > { %634 = vrot.lane.b32.xlu1 %v1635_v5, %s1463_s12  ;;  %s1384_s12 = sshll.u32 %s1468_s7, 4  ;;  %s1385_s12 = int_to_ptr.vmem [resolvable:$false] %s1384_s12 }
 0x31b   : > { %p1383_p2 = pneg %p1382_p1  ;;  %p1387_p6 = scmp.lt.s32.totalorder %s1742_s21, %s1385_s12 }
 0x386   : > { %v374_v39 = vpop.xlane.xlu0 %373 }
 0x387   : > { %1288 = vrcp.f32 %v374_v39 }
 0x38a   : > { %v379_v40 = vpop.permute.xlu0 %378 }
 0x38b   : > { %v385_v41 = vsel %vm383_vm4, %v379_v40, 0 }
 0x38c   : > { %1135 = vmatpush3.bf16.msra.mxu0 %v385_v41 }
 0x38d   : > { %1146 = vmatprep.subr.bf16.mxu0 %v1455_v0 }
 0x38e   : > { %v487_v42 = vpop.xlane.xlu1 %486  ;;  %v633_v4 = vpop.permute.xlu0 %632 }
 0x38f   : > { %1290 = vrcp.f32 %v487_v42 }
 0x392   : > { %v492_v45 = vpop.permute.xlu1 %491 }
 0x393   : > { %v497_v47 = vsel %vm383_vm4, %v492_v45, 0 }
 0x394   : > { %v1289_v43 = vpop.eup %1288 }
 0x395   : > { %v376_v44 = vmul.f32 %v1289_v43, %v1285_v35 }
 0x396   : > { %v635_v60 = vpop.permute.xlu1 %634 }
 0x397   : > { %v377_v46 = vpack.c.bf16 %v376_v44, %v376_v44  ;;  %v640_v1 = vsel %vm318_vm2, %v635_v60, 0 }
 0x399   : > { %1137 = vmatmul.mubr.msk.bf16.vlgmr.msra.gmra.mxu0 %vm318_vm2, %v377_v46 }
 0x39a   : > { %1147 = vmatpush3.bf16.msra.mxu0 %v497_v47  ;;  %1148 = vmatprep.mubr.msk.bf16.mxu0 %vm1456_vm0, %v1455_v0 }
 0x39b   : > { %1158 = vmatprep.subr.bf16.mxu0 %v1455_v0 }
 0x39c   : > { %v1291_v48 = vpop.eup %1290 }
 0x39d   : > { %v489_v49 = vmul.f32 %v1291_v48, %v1287_v37  ;;  %v307_v37 = vld [vmem:[#allocation7 + $0x8] sm:$0xf] }
 0x39e   : > { %v748_v38 = vsel %vm383_vm4, %v307_v37, 0 }
 0x39f   : > { %v490_v50 = vpack.c.bf16 %v489_v49, %v489_v49 }
 0x3a1   : > { %1149 = vmatmul.mubr.msk.bf16.vlgmr.msra.gmra.mxu0 %vm318_vm2, %v490_v50 }
 0x3a2   : > { %1160 = vmatprep.mubr.msk.bf16.mxu0 %vm1456_vm0, %v1455_v0  ;;  %1159 = vmatpush3.bf16.msra.mxu0 %v590_v52 }
 0x3a3   : > { %1170 = vmatprep.subr.bf16.mxu0 %v1455_v0 }
 0x459   : > { %v421_v55 = vpop.f32.mrf.mxu0 }
 0x45a   : > { %v427_v56 = vpack.c.bf16 %v421_v55, %v421_v55 }
 0x45b   : > { %v1138_v57 = vpop.f32.mrf.mxu0 }
 0x45c   : > { %1161 = vmatmul.mubr.msk.bf16.vlgmr.msra.gmra.mxu0 %vm318_vm2, %v427_v56  ;;  %v308_v56 = vld [vmem:[#allocation7 + $0xc] sm:$0xf] }
 0x45d   : > { %v424_v58 = vpop.f32.mrf.mxu0  ;;  %1172 = vmatprep.mubr.msk.bf16.mxu0 %vm1456_vm0, %v1455_v0 }
 0x45e   : > { %v907_v58 = vsel %vm383_vm4, %v308_v56, 0 }
 0x45f   : > { %v1139_v59 = vpop.f32.mrf.mxu0 }
 0x461   : > { %v533_v61 = vpop.f32.mrf.mxu0 }
 0x462   : > { %v539_v62 = vpack.c.bf16 %v533_v61, %v533_v61 }
 0x463   : > { %v1150_v63 = vpop.f32.mrf.mxu0 }
 0x464   : > { %1155 = vmatmul.mubr.msk.bf16.vlgmr.msra.gmra.mxu1 %vm318_vm2, %v539_v62 }
 0x465   : > { %1165 = vmatpush3.bf16.xpose.msra.mxu1 %v640_v1  ;;  %v536_v2 = vpop.f32.mrf.mxu0  ;;  %1166 = vmatprep.mubr.msk.bf16.mxu1 %vm1456_vm0, %v1455_v0 }
 0x466   : > { %1176 = vmatprep.subr.bf16.mxu1 %v1455_v0 }
 0x467   : > { %v1151_v3 = vpop.f32.mrf.mxu0 }
 0x46c   : > { %1167 = vmatmul.mubr.msk.bf16.vlgmr.msra.gmra.mxu1 %vm318_vm2, %v633_v4 }
 0x46d   : > { %1178 = vmatprep.mubr.msk.bf16.mxu1 %vm1456_vm0, %v1455_v0  ;;  %1177 = vmatpush3.bf16.msra.mxu1 %v748_v38 }
 0x46e   : > { %1188 = vmatprep.subr.bf16.mxu1 %v1455_v0 }
 0x51c   : > { %v626_v6 = vpop.f32.mrf.mxu0 }
 0x51e   : > { %v1162_v7 = vpop.f32.mrf.mxu0 }
 0x51f   : > { %v1088_v7 = vld [vmem:[%s1787_s3] ss:$0 sm:$0xff] }
 0x520   : > { %v629_v8 = vpop.f32.mrf.mxu0 }
 0x522   : > { %v1163_v9 = vpop.f32.mrf.mxu0 }
 0x524   : > { %v580_v10 = vpop.f32.mrf.mxu1 }
 0x525   : > { %v1696_v11 = vadd.f32 %v626_v6, %v580_v10 }
 0x526   : > { %v1156_v12 = vpop.f32.mrf.mxu1 }
 0x528   : > { %v583_v13 = vpop.f32.mrf.mxu1 }
 0x52a   : > { %v1157_v14 = vpop.f32.mrf.mxu1 }
 0x52c   : > { %v676_v17 = vpop.f32.mrf.mxu1 }
 0x52d   : > { %v682_v18 = vsel %vm314_vm3, %v676_v17, -1e+30 }
 0x52e   : > { %v1168_v19 = vpop.f32.mrf.mxu1  ;;  %v683_v20 = vsel %vm318_vm2, %v682_v18, -inf }
 0x52f   : > { %684 = vmax.xlane.f32.xlu1 %v683_v20 }
 0x530   : > { %v679_v21 = vpop.f32.mrf.mxu1 }
 0x532   : > { %v1169_v22 = vpop.f32.mrf.mxu1 }
 0x540   : > { %793 = vrot.lane.b32.xlu1 %v1635_v5, %s1464_s13  ;;  %s1386_s13 = scalar_lea.vmem %s1385_s12, 256 }
 0x541   : > { %p1388_p12 = scmp.lt.s32.totalorder %s1386_s13, %s1380_s6 }
 0x543   : > { %p1389_p7 = por %p1388_p12, %p1387_p6 }
 0x544   : > { %791 = vrot.lane.b32.xlu1 %v1635_v5, %s1465_s25 }
 0x545   : > { %p1390_p9 = pnand %p1389_p7, %p1383_p2 }
 0x5b8   : > { %v685_v23 = vpop.xlane.xlu1 %684 }
 0x5b9   : > { %v686_v24 = vsub.f32 %v682_v18, %v685_v23 }
 0x5bb   : > { %v687_v25 = vmul.f32 1.442695, %v686_v24 }
 0x5bc   : > { %v794_v33 = vpop.permute.xlu1 %793 }
 0x5bd   : > { %1292 = vpow2.f32 %v687_v25  ;;  %v799_v35 = vsel %vm318_vm2, %v794_v33, 0 }
 0x5c0   : > { %v792_v36 = vpop.permute.xlu1 %791 }
 0x5ca   : > { %v1293_v26 = vpop.eup %1292 }
 0x5cb   : > { %v689_v27 = vsel %vm318_vm2, %v1293_v26, 0.0 }
 0x5cc   : > { %690 = vadd.xlane.f32.xlu0 %v689_v27 }
 0x5e2   : > { %695 = vrot.lane.b32.xlu0 %v1635_v5, %s1466_s26 }
 0x655   : > { %v691_v28 = vpop.xlane.xlu0 %690 }
 0x656   : > { %1294 = vrcp.f32 %v691_v28 }
 0x659   : > { %v696_v29 = vpop.permute.xlu0 %695 }
 0x65a   : > { %v701_v30 = vsel %vm383_vm4, %v696_v29, 0 }
 0x65b   : > { %1171 = vmatpush3.bf16.msra.mxu0 %v701_v30 }
 0x65c   : > { %1182 = vmatprep.subr.bf16.mxu0 %v1455_v0 }
 0x663   : > { %v1295_v31 = vpop.eup %1294 }
 0x664   : > { %v693_v32 = vmul.f32 %v1295_v31, %v1293_v26 }
 0x666   : > { %v694_v34 = vpack.c.bf16 %v693_v32, %v693_v32 }
 0x668   : > { %1173 = vmatmul.mubr.msk.bf16.vlgmr.msra.gmra.mxu0 %vm318_vm2, %v694_v34 }
 0x669   : > { %1183 = vmatpush3.bf16.xpose.msra.mxu0 %v799_v35  ;;  %1184 = vmatprep.mubr.msk.bf16.mxu0 %vm1456_vm0, %v1455_v0 }
 0x66a   : > { %1194 = vmatprep.subr.bf16.mxu0 %v1455_v0 }
 0x670   : > { %1185 = vmatmul.mubr.msk.bf16.vlgmr.msra.gmra.mxu0 %vm318_vm2, %v792_v36 }
 0x671   : > { %1196 = vmatprep.mubr.msk.bf16.mxu0 %vm1456_vm0, %v1455_v0  ;;  %1195 = vmatpush3.bf16.msra.mxu0 %v907_v58 }
 0x728   : > { %v737_v39 = vpop.f32.mrf.mxu0 }
 0x729   : > { %v743_v40 = vpack.c.bf16 %v737_v39, %v737_v39 }
 0x72a   : > { %v1174_v41 = vpop.f32.mrf.mxu0 }
 0x72b   : > { %1179 = vmatmul.mubr.msk.bf16.vlgmr.msra.gmra.mxu1 %vm318_vm2, %v743_v40 }
 0x72c   : > { %v740_v42 = vpop.f32.mrf.mxu0  ;;  %1190 = vmatprep.mubr.msk.bf16.mxu1 %vm1456_vm0, %v1455_v0 }
 0x72e   : > { %v1175_v43 = vpop.f32.mrf.mxu0 }
 0x730   : > { %v835_v44 = vpop.f32.mrf.mxu0 }
 0x731   : > { %v841_v45 = vsel %vm314_vm3, %v835_v44, -1e+30 }
 0x732   : > { %v1186_v46 = vpop.f32.mrf.mxu0  ;;  %v842_v47 = vsel %vm318_vm2, %v841_v45, -inf }
 0x733   : > { %843 = vmax.xlane.f32.xlu0 %v842_v47 }
 0x734   : > { %v838_v48 = vpop.f32.mrf.mxu0 }
 0x736   : > { %v1187_v49 = vpop.f32.mrf.mxu0 }
 0x749   : > { %854 = vrot.lane.b32.xlu0 %v1635_v5, %s1467_s24 }
 0x7bc   : > { %v844_v50 = vpop.xlane.xlu0 %843 }
 0x7bd   : > { %v845_v51 = vsub.f32 %v841_v45, %v844_v50 }
 0x7bf   : > { %v846_v52 = vmul.f32 1.442695, %v845_v51 }
 0x7c0   : > { %v855_v53 = vpop.permute.xlu0 %854 }
 0x7c1   : > { %1296 = vpow2.f32 %v846_v52  ;;  %v860_v0 = vsel %vm383_vm4, %v855_v53, 0 }
 0x7c2   : > { %1189 = vmatpush3.bf16.msra.mxu1 %v860_v0 }
 0x7ce   : > { %v1297_v54 = vpop.eup %1296 }
 0x7cf   : > { %v848_v15 = vsel %vm318_vm2, %v1297_v54, 0.0 }
 0x7d0   : > { %849 = vadd.xlane.f32.xlu1 %v848_v15 }
 0x7eb   : > { %v784_v16 = vpop.f32.mrf.mxu1 }
 0x7ec   : > { %v790_v55 = vadd.f32 %v784_v16, %v1696_v11 }
 0x7ed   : > { %v1180_v57 = vpop.f32.mrf.mxu1 }
 0x7ef   : > { %v787_v5 = vpop.f32.mrf.mxu1 }
 0x7f1   : > { %v1181_v59 = vpop.f32.mrf.mxu1 }
 0x859   : > { %v850_v60 = vpop.xlane.xlu1 %849 }
 0x85a   : > { %1298 = vrcp.f32 %v850_v60 }
 0x867   : > { %v1299_v61 = vpop.eup %1298 }
 0x868   : > { %v852_v62 = vmul.f32 %v1299_v61, %v1297_v54 }
 0x86a   : > { %v853_v63 = vpack.c.bf16 %v852_v62, %v852_v62 }
 0x86c   : > { %1191 = vmatmul.mubr.msk.bf16.vlgmr.msra.gmra.mxu1 %vm318_vm2, %v853_v63 }
 0x92c   : > { %v896_v1 = vpop.f32.mrf.mxu1 }
 0x92d   : > { %v902_v2 = vpack.c.bf16 %v896_v1, %v896_v1 }
 0x92e   : > { %v1192_v3 = vpop.f32.mrf.mxu1 }
 0x92f   : > { %1197 = vmatmul.mubr.msk.bf16.vlgmr.msra.gmra.mxu0 %vm318_vm2, %v902_v2 }
 0x930   : > { %v899_v4 = vpop.f32.mrf.mxu1 }
 0x932   : > { %v1193_v6 = vpop.f32.mrf.mxu1 }
 0x9ef   : > { %v943_v8 = vpop.f32.mrf.mxu0 }
 0x9f0   : > { %v949_v9 = vadd.f32 %v943_v8, %v790_v55 }
 0x9f1   : > { %v1198_v10 = vpop.f32.mrf.mxu0 }
 0x9f2   : > { %v956_v11 = vadd.f32 %v1088_v7, %v949_v9 }
 0x9f3   : > { %v946_v12 = vpop.f32.mrf.mxu0 }
 0x9f4   : > { %957 = vst.msk [vmem:[%s241_s10] sm:$0xff] %vm260_vm1, %v956_v11 }
 0x9f5   : > { %v1199_v13 = vpop.f32.mrf.mxu0 }
 0x9f6   : > { %1393 = shalt.err (!%p1390_p9)
}
 0x9f7   : > { %s1394_s25 = scalar_lea.hbm %s1740_s5, 128  ;;  %s1398_s24 = scalar_lea.hbm %s1788_s4, 256 }
 0x9f8   : > { %p1395_p13 = scmp.ne.s32.totalorder %s1740_s5, %s1394_s25  ;;  %p1399_p0 = scmp.lt.s32.totalorder %s1740_s5, %s1788_s4 }
 0x9f9   : > { %p1400_p4 = scmp.lt.s32.totalorder %s1398_s24, %s1394_s25 }
 0x9fa   : > { %p1396_p5 = pnand %p1395_p13, %p1804_p11 }
 0x9fb   : > { %p1401_p8 = por %p1400_p4, %p1399_p0 }
 0x9fc   : > { %p1397_p10 = pneg %p1396_p5 }
 0x9fe   : > { %p1402_p3 = pnand %p1401_p8, %p1397_p10 }
 0xa00   : > { %1405 = shalt.err (!%p1402_p3)
}
 0xa01   : > { %1210 = dma.vmem_to_hbm [thread:$0]  (%p1804_p11), %s1742_s21, 128, %s1740_s5, %s959_s19  }
 0xa02 PF: > { %s984_s8 = sand.u32 1, %s1436_s15   ;;  %p1805_p1 = scmp.ne.s32.totalorder %s1794_s22, 0 }
 0xa03   : > { %p1806_p2 = scmp.ge.s32.totalorder %s1448_s18, 2  ;;  %s985_s9 = scalar_lea.sflag [#allocation4], %s984_s8 }
 0xa05   : > { %p1224_p6 = pnand %p1806_p2, %p1805_p1 }
 0xa07   : > { %p1225_p12 = pneg %p1224_p6 }
 0xa09   : > { %1431 = dma.done.wait (%p1225_p12), %s985_s9, 128  }
 0xa0a   : > { %1433 = vsyncadd (%p1225_p12), %s985_s9, 4294967168  ;;  %p18_p7 = scmp.ge.s32.totalorder %s1566_s11, 4   ;;  %s1807_s15 = smov %s1440_s16 }
 0xa0b   : > { %s1808_s16 = smov %s1444_s17  ;;  %s1809_s17 = smov %s1582_s20 }
 0xa0c   : > { %s1810_s18 = smov %s1566_s11  ;;  %20 = sbr.rel (!%p18_p7) target bundleno = 6 (0x6), region = 89 }
 0xa11   :  { %990 = vsyncpa [#allocation3], 1 }
 0xa12   :  { %992 = vsyncpa [#allocation3 + $0x1], 1 }
 0xa13   :  { %993 = vsyncpa [#allocation6], 1 }
 0xa14   :  { %994 = vsyncpa [#allocation4], 1 }
 0xa15   :  { %996 = vsyncpa [#allocation4 + $0x1], 1 }

// kernel: tpu_custom_call.1
= control target key start
LH: loop header
LB: loop body
LE: loop exit
PB: predicated region body
PF: predicated region fallthrough
CT: control target
= control target key end

     0   :  { %9 = vsyncpa [#allocation3], 0  ;;  %s1784_s0 = inlined_call_operand.hbm [shape: bf16[2,8,32], index: 0, kind: input, shape index: {}]   ;;  %s1785_s1 = inlined_call_operand.hbm [shape: bf16[32,96], index: 1, kind: input, shape index: {}]   ;;  %s1786_s2 = inlined_call_operand.hbm [shape: bf16[32,32], index: 2, kind: input, shape index: {}]   ;;  %s1787_s3 = inlined_call_operand.vmem [shape: f32[1,32], index: 3, kind: input, shape index: {}]   ;;  %s1788_s4 = inlined_call_operand.hbm [shape: f32[2,8,32], index: 4, kind: output, shape index: {}]  }
   0x1   :  { %11 = vsyncpa [#allocation3 + $0x1], 0 }
   0x2   :  { %12 = vsyncpa [#allocation6], 0 }
   0x3   :  { %13 = vsyncpa [#allocation4], 0 }
   0x4   :  { %15 = vsyncpa [#allocation4 + $0x1], 0  ;;  %s1494_s15 = smov 0   ;;  %s1496_s16 = smov 0  }
   0x5   :  { %s1498_s17 = smov 0   ;;  %s1500_s18 = smov 0  }
   0x6 LB: > { %s1515_s19 = sadd.s32 4294967295, %s1448_s18   ;;  %s1061_s20 = sadd.s32 4294967294, %s1448_s18   ;;  %s1448_s18 = sphi %s1500_s18, %s1810_s18   ;;  %s1444_s17 = sphi %s1498_s17, %s1809_s17   ;;  %s1440_s16 = sphi %s1496_s16, %s1808_s16   ;;  %s1436_s15 = sphi %s1494_s15, %s1807_s15  }
   0x7   : > { %p41_p0 = scmp.ne.s32.totalorder %s1440_s16, %s1436_s15  ;;  %p1789_p1 = scmp.eq.s32.totalorder %s1515_s19, 0 }
   0x8   : > { %p134_p3 = scmp.eq.s32.totalorder %s1061_s20, 1  ;;  %p1062_p5 = scmp.ge.s32.totalorder %s1448_s18, 1 }
   0x9   : > { %p1524_p4 = por %p1789_p1, %p41_p0  ;;  %p141_p7 = scmp.lt.s32.totalorder %s1448_s18, 3 }
   0xa   : > { %p1529_p6 = por %p134_p3, %p41_p0  ;;  %s1450_s24 = smov [#allocation5]  }
   0xb   : > { %s1793_s21 = scalar_select %p1524_p4, 1, 0 }
   0xc   : > { %s1794_s22 = scalar_select %p1529_p6, 1, 0 }
   0xd   : > { %p1534_p8 = pnand %p1062_p5, %p141_p7  ;;  %s153_s25 = sshll.u32 %s1450_s24, 4  ;;  %s154_s25 = int_to_ptr.vmem [resolvable:$true] %s153_s25 }
   0xe   : > { %s1451_s27 = smov [#allocation7]   ;;  %s1311_s29 = scalar_lea.vmem %s154_s25, 256 }
   0xf   : > { %s1795_s23 = scalar_select %p1534_p8, 1, 0 }
  0x10   : > { %p1212_p9 = pneg %p1534_p8  ;;  %s166_s28 = sshll.u32 %s1451_s27, 4  ;;  %s167_s28 = int_to_ptr.vmem [resolvable:$true] %s166_s28 }
  0x11   : > { %p1312_p13 = scmp.ne.s32.totalorder %s154_s25, %s1311_s29  ;;  %p1319_p5 = scmp.lt.s32.totalorder %s154_s25, %s154_s25 }
  0x12   : > { %p1543_p11 = pnand %p1212_p9, %p1789_p1  ;;  %p1320_p7 = scmp.lt.s32.totalorder %s1311_s29, %s1311_s29 }
  0x14   : > { %p1302_p12 = pneg %p1543_p11  ;;  %p1321_p10 = por %p1320_p7, %p1319_p5 }
  0x16   : > { %p1314_p0 = pnand %p1312_p13, %p1302_p12 }
  0x18   : > { %p1315_p3 = pneg %p1314_p0 }
  0x1a   : > { %p1322_p9 = pnand %p1321_p10, %p1315_p3 }
  0x1c   : > { %1325 = shalt.err (!%p1322_p9)
}
  0x1d   : > { %s1452_s30 = smov 64   ;;  %s1453_s5 = smov 4  }
  0x1e   : > { %1215 = dma.hbm_to_vmem [thread:$0]  (!%p1543_p11), %s1785_s1, 256, %s154_s25, [#allocation6], %s1452_s30, %s1452_s30, %s1453_s5  }
  0x1f   : > { %s1337_s8 = scalar_lea.vmem %s167_s28, 256  ;;  %p1345_p2 = scmp.lt.s32.totalorder %s167_s28, %s167_s28 }
  0x20   : > { %p1338_p1 = scmp.ne.s32.totalorder %s167_s28, %s1337_s8  ;;  %p1346_p6 = scmp.lt.s32.totalorder %s1337_s8, %s1337_s8 }
  0x22   : > { %p1340_p13 = pnand %p1338_p1, %p1302_p12  ;;  %p1347_p5 = por %p1346_p6, %p1345_p2 }
  0x24   : > { %p1341_p0 = pneg %p1340_p13 }
  0x26   : > { %p1348_p10 = pnand %p1347_p5, %p1341_p0 }
  0x28   : > { %1351 = shalt.err (!%p1348_p10)
}
  0x29   : > { %1218 = dma.hbm_to_vmem [thread:$0]  (!%p1543_p11), %s1786_s2, 256, %s167_s28, [#allocation6], %s1452_s30, %s1452_s30, %s1453_s5  }
  0x2a   : > { %s1566_s11 = sadd.s32 1, %s1448_s18   ;;  %s28_s12 = sadd.s32 1, %s1444_s17 }
  0x2b   : > { %s25_s13 = ssub.s32 %s1448_s18, %s1566_s11  ;;  %p35_p1 = scmp.ne.s32.totalorder %s1444_s17, %s1440_s16 }
  0x2c   : > { %p26_p2 = scmp.eq.s32.totalorder %s25_s13, 0  ;;  %p36_p6 = scmp.eq.s32.totalorder %s1448_s18, 0 }
  0x2d   : > { %p1797_p12 = scmp.eq.s32.totalorder %s1515_s19, 1  ;;  %p1229_p7 = scmp.lt.s32.totalorder %s1448_s18, 2 }
  0x2e   : > { %s1582_s20 = scalar_select %p26_p2, %s1444_s17, %s28_s12  }
  0x2f   : > { %p1576_p3 = por %p1797_p12, %p35_p1  ;;  %p37_p9 = por %p36_p6, %p35_p1 }
  0x30   : > { %s183_s24 = sand.u32 1, %s1444_s17   ;;  %s1067_s26 = sshll.u32 %s1448_s18, 6 }
  0x31   : > { %s1798_s14 = scalar_select %p1576_p3, 1, 0 }
  0x32   : > { %s1066_s25 = sshll.u32 %s183_s24, 2  ;;  %s1589_s29 = scalar_lea.hbm %s1784_s0, %s1067_s26 }
  0x33   : > { %s187_s30 = scalar_lea.vmem [#allocation2], %s1066_s25  ;;  %p1591_p11 = pnand %p1229_p7, %p37_p9 }
  0x34   : > { %s194_s5 = sshll.u32 %s187_s30, 4  ;;  %s184_s7 = scalar_lea.sflag [#allocation3], %s183_s24  ;;  %s195_s5 = int_to_ptr.vmem [resolvable:$true] %s194_s5 }
  0x35   : > { %s1352_s8 = scalar_lea.hbm %s1589_s29, 64  ;;  %p1354_p0 = pneg %p1591_p11 }
  0x36   : > { %p1353_p13 = scmp.ne.s32.totalorder %s1589_s29, %s1352_s8  ;;  %s1357_s12 = scalar_lea.hbm %s1784_s0, 128 }
  0x37   : > { %p1358_p1 = scmp.lt.s32.totalorder %s1589_s29, %s1784_s0  ;;  %p1359_p2 = scmp.lt.s32.totalorder %s1357_s12, %s1352_s8 }
  0x38   : > { %p1355_p5 = pnand %p1354_p0, %p1353_p13 }
  0x39   : > { %p1360_p6 = por %p1359_p2, %p1358_p1 }
  0x3a   : > { %p1356_p10 = pneg %p1355_p5 }
  0x3c   : > { %p1361_p12 = pnand %p1360_p6, %p1356_p10 }
  0x3e   : > { %1364 = shalt.err (!%p1361_p12)
}
  0x3f   : > { %s1365_s26 = scalar_lea.vmem %s195_s5, 64  ;;  %s1454_s24 = smov [#allocation2]  }
  0x40   : > { %p1366_p7 = scmp.ne.s32.totalorder %s195_s5, %s1365_s26  ;;  %s1370_s27 = sshll.u32 %s1454_s24, 4  ;;  %s1371_s27 = int_to_ptr.vmem [resolvable:$false] %s1370_s27 }
  0x41   : > { %s1372_s28 = scalar_lea.vmem %s1371_s27, 128  ;;  %p1373_p13 = scmp.lt.s32.totalorder %s195_s5, %s1371_s27 }
  0x42   : > { %p1368_p9 = pnand %p1366_p7, %p1354_p0  ;;  %p1374_p5 = scmp.lt.s32.totalorder %s1372_s28, %s1365_s26 }
  0x44   : > { %p1369_p3 = pneg %p1368_p9  ;;  %p1375_p4 = por %p1374_p5, %p1373_p13 }
  0x46   : > { %p1376_p8 = pnand %p1375_p4, %p1369_p3 }
  0x48   : > { %1379 = shalt.err (!%p1376_p8)
}
  0x49   : > { %1222 = dma.hbm_to_vmem [thread:$0]  (!%p1591_p11), %s1589_s29, 64, %s195_s5, %s184_s7  }
  0x4a   : > { %p1800_p10 = scmp.ne.s32.totalorder %s1795_s23, 0 }
  0x4b   : > { %s1612_s30 = sand.u32 (!%p1800_p10), 1, %s1440_s16   ;;  %p1801_p0 = scmp.ne.s32.totalorder (!%p1800_p10), %s1793_s21, 0 }
  0x4c   : > { %203 = sbr.rel (%p1800_p10) target bundleno = 2562 (0xa02), region = 36  ;;  %s1069_s8 = sshll.u32 (!%p1800_p10), %s1612_s30, 2 }
  0x4d   : > { %s206_s9 = scalar_lea.sflag (!%p1800_p10), [#allocation3], %s1612_s30  ;;  %s209_s10 = scalar_lea.vmem (!%p1800_p10), [#allocation2], %s1069_s8 }
  0x51   : > { %1423 = dma.done.wait (%p1801_p0), %s206_s9, 64  }
  0x52   : > { %1425 = vsyncadd (%p1801_p0), %s206_s9, 4294967232  ;;  %p1802_p4 = scmp.eq.s32.totalorder %s1515_s19, 0 }
  0x54   : > { %1427 = dma.done.wait (%p1802_p4), [#allocation6], 512   ;;  %p1803_p8 = pmov %p1802_p4 }
  0x55   : > { %v1455_v0 = vmov 0.0   ;;  %vm1456_vm0 = vmmov 0   ;;  %v1282_v1 = vld [vmem:[#allocation5 + $0x8] sm:$0xff]   ;;  %v1283_v2 = vld [vmem:[#allocation5] sm:$0xff]   ;;  %v243_v3 = vld [vmem:[%s209_s10] sm:$0xf]  ;;  %v310_v14 = vlaneseq }
  0x56   : > { %1429 = vsyncadd (%p1803_p8), [#allocation6], 4294966784  ;;  %1120 = vmatprep.subr.bf16.mxu0 %v1455_v0  ;;  %1124 = vmatprep.mubr.msk.bf16.mxu0 %vm1456_vm0, %v1455_v0  ;;  %vm260_vm1 = vcmask 261120   ;;  %s1457_s21 = smov 120   ;;  %s1458_s23 = smov 96   ;;  %vm318_vm2 = vcmask 64512  }
  0x57   : > { %1128 = vmatprep.subr.bf16.mxu1 %v1455_v0  ;;  %1130 = vmatprep.mubr.msk.bf16.mxu1 %vm1456_vm0, %v1455_v0  ;;  %s1459_s29 = smov 88   ;;  %v1651_v15 = vshrl.u32 %v310_v14, 7  ;;  %v1653_v16 = vand.u32 127, %v310_v14  ;;  %s1460_s5 = smov 64   ;;  %vm383_vm4 = vcmask 1043456  }
  0x58   : > { %1121 = vmatpush3.bf16.msra.mxu0 %v1282_v1  ;;  %s1461_s6 = smov 56   ;;  %s1462_s7 = smov 112   ;;  %v305_v51 = vld [vmem:[#allocation7] sm:$0xf]  ;;  %v306_v53 = vld [vmem:[#allocation7 + $0x4] sm:$0xf] }
  0x59   : > { %1122 = vmatprep.subr.bf16.mxu0 %v1455_v0  ;;  %vm314_vm3 = vcmp.ge.s32.totalorder %v1651_v15, %v1653_v16  ;;  %s1463_s12 = smov 80   ;;  %v590_v52 = vsel %vm383_vm4, %v305_v51, 0  ;;  %v544_v54 = vsel %vm383_vm4, %v306_v53, 0  ;;  %s1464_s13 = smov 72  }
  0x5a   : > { %s1465_s25 = smov 104   ;;  %s1466_s26 = smov 48  }
  0x5b   : > { %s1467_s24 = smov 40   ;;  %s1072_s27 = sshll.u32 %s1612_s30, 3 }
  0x5c   : > { %1123 = vmatpush3.bf16.msra.mxu0 %v1283_v2  ;;  %s1090_s9 = sshll.u32 %s1515_s19, 7  ;;  %s241_s10 = scalar_lea.vmem [#allocation8], %s1072_s27 }
  0x5d   : > { %1134 = vmatprep.subr.bf16.mxu0 %v1455_v0  ;;  %s959_s19 = scalar_lea.sflag [#allocation4], %s1612_s30  ;;  %p1804_p11 = scmp.ne.s32.totalorder %s1798_s14, 0 }
  0x5f   : > { %1125 = vmatmul.mubr.msk.bf16.vlgmr.msra.gmra.mxu0 %vm260_vm1, %v243_v3 }
  0x60   : > { %1136 = vmatprep.mubr.msk.bf16.mxu0 %vm1456_vm0, %v1455_v0 }
 0x11f   : > { %v298_v4 = vpop.f32.mrf.mxu0 }
 0x120   : > { %v1635_v5 = vpack.c.bf16 %v298_v4, %v298_v4 }
 0x121   : > { %v1126_v6 = vpop.f32.mrf.mxu0 }
 0x122   : > { %428 = vrot.lane.b32.xlu1 %v1635_v5, %s1457_s21  ;;  %316 = vrot.lane.b32.xlu0 %v1635_v5, %s1458_s23  ;;  %s972_s21 = sshll.u32 %s241_s10, 4  ;;  %s1742_s21 = int_to_ptr.vmem [resolvable:$true] %s972_s21 }
 0x123   : > { %v301_v7 = vpop.f32.mrf.mxu0 }
 0x125   : > { %v1127_v8 = vpop.f32.mrf.mxu0 }
 0x126   : > { %430 = vrot.lane.b32.xlu0 %v1635_v5, %s1459_s29 }
 0x194   : > { %v317_v9 = vpop.permute.xlu0 %316  ;;  %v429_v13 = vpop.permute.xlu1 %428 }
 0x195   : > { %v323_v10 = vsel %vm318_vm2, %v317_v9, 0 }
 0x196   : > { %1129 = vmatpush3.bf16.xpose.msra.mxu1 %v323_v10 }
 0x197   : > { %1140 = vmatprep.subr.bf16.mxu1 %v1455_v0 }
 0x198   : > { %v431_v11 = vpop.permute.xlu0 %430 }
 0x199   : > { %v436_v12 = vsel %vm318_vm2, %v431_v11, 0 }
 0x19d   : > { %1131 = vmatmul.mubr.msk.bf16.vlgmr.msra.gmra.mxu1 %vm318_vm2, %v1635_v5 }
 0x19e   : > { %1141 = vmatpush3.bf16.xpose.msra.mxu1 %v436_v12  ;;  %1142 = vmatprep.mubr.msk.bf16.mxu1 %vm1456_vm0, %v1455_v0 }
 0x19f   : > { %1152 = vmatprep.subr.bf16.mxu1 %v1455_v0 }
 0x1a5   : > { %1143 = vmatmul.mubr.msk.bf16.vlgmr.msra.gmra.mxu1 %vm318_vm2, %v429_v13 }
 0x1a6   : > { %1154 = vmatprep.mubr.msk.bf16.mxu1 %vm1456_vm0, %v1455_v0  ;;  %1153 = vmatpush3.bf16.msra.mxu1 %v544_v54 }
 0x1a7   : > { %1164 = vmatprep.subr.bf16.mxu1 %v1455_v0 }
 0x25d   : > { %v359_v17 = vpop.f32.mrf.mxu1 }
 0x25e   : > { %v365_v18 = vsel %vm314_vm3, %v359_v17, -1e+30 }
 0x25f   : > { %v1132_v19 = vpop.f32.mrf.mxu1  ;;  %v366_v20 = vsel %vm318_vm2, %v365_v18, -inf }
 0x260   : > { %367 = vmax.xlane.f32.xlu1 %v366_v20 }
 0x261   : > { %v362_v21 = vpop.f32.mrf.mxu1 }
 0x263   : > { %v1133_v22 = vpop.f32.mrf.mxu1 }
 0x265   : > { %v472_v23 = vpop.f32.mrf.mxu1 }
 0x266   : > { %v478_v24 = vsel %vm314_vm3, %v472_v23, -1e+30 }
 0x267   : > { %v1144_v25 = vpop.f32.mrf.mxu1  ;;  %v479_v26 = vsel %vm318_vm2, %v478_v24, -inf }
 0x268   : > { %480 = vmax.xlane.f32.xlu0 %v479_v26 }
 0x269   : > { %v475_v27 = vpop.f32.mrf.mxu1 }
 0x26b   : > { %v1145_v28 = vpop.f32.mrf.mxu1 }
 0x2e9   : > { %v368_v29 = vpop.xlane.xlu1 %367 }
 0x2ea   : > { %v369_v30 = vsub.f32 %v365_v18, %v368_v29 }
 0x2ec   : > { %v370_v31 = vmul.f32 1.442695, %v369_v30 }
 0x2ee   : > { %1284 = vpow2.f32 %v370_v31 }
 0x2f1   : > { %v481_v32 = vpop.xlane.xlu0 %480 }
 0x2f2   : > { %v482_v33 = vsub.f32 %v478_v24, %v481_v32 }
 0x2f4   : > { %v483_v34 = vmul.f32 1.442695, %v482_v33 }
 0x2f6   : > { %1286 = vpow2.f32 %v483_v34 }
 0x2fb   : > { %v1285_v35 = vpop.eup %1284 }
 0x2fc   : > { %v372_v36 = vsel %vm318_vm2, %v1285_v35, 0.0 }
 0x2fd   : > { %373 = vadd.xlane.f32.xlu0 %v372_v36 }
 0x303   : > { %v1287_v37 = vpop.eup %1286 }
 0x304   : > { %v485_v38 = vsel %vm318_vm2, %v1287_v37, 0.0 }
 0x305   : > { %486 = vadd.xlane.f32.xlu1 %v485_v38 }
 0x313   : > { %378 = vrot.lane.b32.xlu0 %v1635_v5, %s1460_s5  ;;  %s1740_s5 = scalar_lea.hbm %s1788_s4, %s1090_s9 }
 0x316   : > { %491 = vrot.lane.b32.xlu1 %v1635_v5, %s1461_s6  ;;  %s1380_s6 = scalar_lea.vmem %s1742_s21, 128 }
 0x317   : > { %632 = vrot.lane.b32.xlu0 %v1635_v5, %s1462_s7  ;;  %p1381_p3 = scmp.ne.s32.totalorder %s1742_s21, %s1380_s6  ;;  %s1468_s7 = smov [#allocation8]  }
 0x319   : > { %p1382_p1 = pnand %p1381_p3, %p1804_p11 }
 0x31a   : > { %634 = vrot.lane.b32.xlu1 %v1635_v5, %s1463_s12  ;;  %s1384_s12 = sshll.u32 %s1468_s7, 4  ;;  %s1385_s12 = int_to_ptr.vmem [resolvable:$false] %s1384_s12 }
 0x31b   : > { %p1383_p2 = pneg %p1382_p1  ;;  %p1387_p6 = scmp.lt.s32.totalorder %s1742_s21, %s1385_s12 }
 0x386   : > { %v374_v39 = vpop.xlane.xlu0 %373 }
 0x387   : > { %1288 = vrcp.f32 %v374_v39 }
 0x38a   : > { %v379_v40 = vpop.permute.xlu0 %378 }
 0x38b   : > { %v385_v41 = vsel %vm383_vm4, %v379_v40, 0 }
 0x38c   : > { %1135 = vmatpush3.bf16.msra.mxu0 %v385_v41 }
 0x38d   : > { %1146 = vmatprep.subr.bf16.mxu0 %v1455_v0 }
 0x38e   : > { %v487_v42 = vpop.xlane.xlu1 %486  ;;  %v633_v4 = vpop.permute.xlu0 %632 }
 0x38f   : > { %1290 = vrcp.f32 %v487_v42 }
 0x392   : > { %v492_v45 = vpop.permute.xlu1 %491 }
 0x393   : > { %v497_v47 = vsel %vm383_vm4, %v492_v45, 0 }
 0x394   : > { %v1289_v43 = vpop.eup %1288 }
 0x395   : > { %v376_v44 = vmul.f32 %v1289_v43, %v1285_v35 }
 0x396   : > { %v635_v60 = vpop.permute.xlu1 %634 }
 0x397   : > { %v377_v46 = vpack.c.bf16 %v376_v44, %v376_v44  ;;  %v640_v1 = vsel %vm318_vm2, %v635_v60, 0 }
 0x399   : > { %1137 = vmatmul.mubr.msk.bf16.vlgmr.msra.gmra.mxu0 %vm318_vm2, %v377_v46 }
 0x39a   : > { %1147 = vmatpush3.bf16.msra.mxu0 %v497_v47  ;;  %1148 = vmatprep.mubr.msk.bf16.mxu0 %vm1456_vm0, %v1455_v0 }
 0x39b   : > { %1158 = vmatprep.subr.bf16.mxu0 %v1455_v0 }
 0x39c   : > { %v1291_v48 = vpop.eup %1290 }
 0x39d   : > { %v489_v49 = vmul.f32 %v1291_v48, %v1287_v37  ;;  %v307_v37 = vld [vmem:[#allocation7 + $0x8] sm:$0xf] }
 0x39e   : > { %v748_v38 = vsel %vm383_vm4, %v307_v37, 0 }
 0x39f   : > { %v490_v50 = vpack.c.bf16 %v489_v49, %v489_v49 }
 0x3a1   : > { %1149 = vmatmul.mubr.msk.bf16.vlgmr.msra.gmra.mxu0 %vm318_vm2, %v490_v50 }
 0x3a2   : > { %1160 = vmatprep.mubr.msk.bf16.mxu0 %vm1456_vm0, %v1455_v0  ;;  %1159 = vmatpush3.bf16.msra.mxu0 %v590_v52 }
 0x3a3   : > { %1170 = vmatprep.subr.bf16.mxu0 %v1455_v0 }
 0x459   : > { %v421_v55 = vpop.f32.mrf.mxu0 }
 0x45a   : > { %v427_v56 = vpack.c.bf16 %v421_v55, %v421_v55 }
 0x45b   : > { %v1138_v57 = vpop.f32.mrf.mxu0 }
 0x45c   : > { %1161 = vmatmul.mubr.msk.bf16.vlgmr.msra.gmra.mxu0 %vm318_vm2, %v427_v56  ;;  %v308_v56 = vld [vmem:[#allocation7 + $0xc] sm:$0xf] }
 0x45d   : > { %v424_v58 = vpop.f32.mrf.mxu0  ;;  %1172 = vmatprep.mubr.msk.bf16.mxu0 %vm1456_vm0, %v1455_v0 }
 0x45e   : > { %v907_v58 = vsel %vm383_vm4, %v308_v56, 0 }
 0x45f   : > { %v1139_v59 = vpop.f32.mrf.mxu0 }
 0x461   : > { %v533_v61 = vpop.f32.mrf.mxu0 }
 0x462   : > { %v539_v62 = vpack.c.bf16 %v533_v61, %v533_v61 }
 0x463   : > { %v1150_v63 = vpop.f32.mrf.mxu0 }
 0x464   : > { %1155 = vmatmul.mubr.msk.bf16.vlgmr.msra.gmra.mxu1 %vm318_vm2, %v539_v62 }
 0x465   : > { %1165 = vmatpush3.bf16.xpose.msra.mxu1 %v640_v1  ;;  %v536_v2 = vpop.f32.mrf.mxu0  ;;  %1166 = vmatprep.mubr.msk.bf16.mxu1 %vm1456_vm0, %v1455_v0 }
 0x466   : > { %1176 = vmatprep.subr.bf16.mxu1 %v1455_v0 }
 0x467   : > { %v1151_v3 = vpop.f32.mrf.mxu0 }
 0x46c   : > { %1167 = vmatmul.mubr.msk.bf16.vlgmr.msra.gmra.mxu1 %vm318_vm2, %v633_v4 }
 0x46d   : > { %1178 = vmatprep.mubr.msk.bf16.mxu1 %vm1456_vm0, %v1455_v0  ;;  %1177 = vmatpush3.bf16.msra.mxu1 %v748_v38 }
 0x46e   : > { %1188 = vmatprep.subr.bf16.mxu1 %v1455_v0 }
 0x51c   : > { %v626_v6 = vpop.f32.mrf.mxu0 }
 0x51e   : > { %v1162_v7 = vpop.f32.mrf.mxu0 }
 0x51f   : > { %v1088_v7 = vld [vmem:[%s1787_s3] ss:$0 sm:$0xff] }
 0x520   : > { %v629_v8 = vpop.f32.mrf.mxu0 }
 0x522   : > { %v1163_v9 = vpop.f32.mrf.mxu0 }
 0x524   : > { %v580_v10 = vpop.f32.mrf.mxu1 }
 0x525   : > { %v1696_v11 = vadd.f32 %v626_v6, %v580_v10 }
 0x526   : > { %v1156_v12 = vpop.f32.mrf.mxu1 }
 0x528   : > { %v583_v13 = vpop.f32.mrf.mxu1 }
 0x52a   : > { %v1157_v14 = vpop.f32.mrf.mxu1 }
 0x52c   : > { %v676_v17 = vpop.f32.mrf.mxu1 }
 0x52d   : > { %v682_v18 = vsel %vm314_vm3, %v676_v17, -1e+30 }
 0x52e   : > { %v1168_v19 = vpop.f32.mrf.mxu1  ;;  %v683_v20 = vsel %vm318_vm2, %v682_v18, -inf }
 0x52f   : > { %684 = vmax.xlane.f32.xlu1 %v683_v20 }
 0x530   : > { %v679_v21 = vpop.f32.mrf.mxu1 }
 0x532   : > { %v1169_v22 = vpop.f32.mrf.mxu1 }
 0x540   : > { %793 = vrot.lane.b32.xlu1 %v1635_v5, %s1464_s13  ;;  %s1386_s13 = scalar_lea.vmem %s1385_s12, 256 }
 0x541   : > { %p1388_p12 = scmp.lt.s32.totalorder %s1386_s13, %s1380_s6 }
 0x543   : > { %p1389_p7 = por %p1388_p12, %p1387_p6 }
 0x544   : > { %791 = vrot.lane.b32.xlu1 %v1635_v5, %s1465_s25 }
 0x545   : > { %p1390_p9 = pnand %p1389_p7, %p1383_p2 }
 0x5b8   : > { %v685_v23 = vpop.xlane.xlu1 %684 }
 0x5b9   : > { %v686_v24 = vsub.f32 %v682_v18, %v685_v23 }
 0x5bb   : > { %v687_v25 = vmul.f32 1.442695, %v686_v24 }
 0x5bc   : > { %v794_v33 = vpop.permute.xlu1 %793 }
 0x5bd   : > { %1292 = vpow2.f32 %v687_v25  ;;  %v799_v35 = vsel %vm318_vm2, %v794_v33, 0 }
 0x5c0   : > { %v792_v36 = vpop.permute.xlu1 %791 }
 0x5ca   : > { %v1293_v26 = vpop.eup %1292 }
 0x5cb   : > { %v689_v27 = vsel %vm318_vm2, %v1293_v26, 0.0 }
 0x5cc   : > { %690 = vadd.xlane.f32.xlu0 %v689_v27 }
 0x5e2   : > { %695 = vrot.lane.b32.xlu0 %v1635_v5, %s1466_s26 }
 0x655   : > { %v691_v28 = vpop.xlane.xlu0 %690 }
 0x656   : > { %1294 = vrcp.f32 %v691_v28 }
 0x659   : > { %v696_v29 = vpop.permute.xlu0 %695 }
 0x65a   : > { %v701_v30 = vsel %vm383_vm4, %v696_v29, 0 }
 0x65b   : > { %1171 = vmatpush3.bf16.msra.mxu0 %v701_v30 }
 0x65c   : > { %1182 = vmatprep.subr.bf16.mxu0 %v1455_v0 }
 0x663   : > { %v1295_v31 = vpop.eup %1294 }
 0x664   : > { %v693_v32 = vmul.f32 %v1295_v31, %v1293_v26 }
 0x666   : > { %v694_v34 = vpack.c.bf16 %v693_v32, %v693_v32 }
 0x668   : > { %1173 = vmatmul.mubr.msk.bf16.vlgmr.msra.gmra.mxu0 %vm318_vm2, %v694_v34 }
 0x669   : > { %1183 = vmatpush3.bf16.xpose.msra.mxu0 %v799_v35  ;;  %1184 = vmatprep.mubr.msk.bf16.mxu0 %vm1456_vm0, %v1455_v0 }
 0x66a   : > { %1194 = vmatprep.subr.bf16.mxu0 %v1455_v0 }
 0x670   : > { %1185 = vmatmul.mubr.msk.bf16.vlgmr.msra.gmra.mxu0 %vm318_vm2, %v792_v36 }
 0x671   : > { %1196 = vmatprep.mubr.msk.bf16.mxu0 %vm1456_vm0, %v1455_v0  ;;  %1195 = vmatpush3.bf16.msra.mxu0 %v907_v58 }
 0x728   : > { %v737_v39 = vpop.f32.mrf.mxu0 }
 0x729   : > { %v743_v40 = vpack.c.bf16 %v737_v39, %v737_v39 }
 0x72a   : > { %v1174_v41 = vpop.f32.mrf.mxu0 }
 0x72b   : > { %1179 = vmatmul.mubr.msk.bf16.vlgmr.msra.gmra.mxu1 %vm318_vm2, %v743_v40 }
 0x72c   : > { %v740_v42 = vpop.f32.mrf.mxu0  ;;  %1190 = vmatprep.mubr.msk.bf16.mxu1 %vm1456_vm0, %v1455_v0 }
 0x72e   : > { %v1175_v43 = vpop.f32.mrf.mxu0 }
 0x730   : > { %v835_v44 = vpop.f32.mrf.mxu0 }
 0x731   : > { %v841_v45 = vsel %vm314_vm3, %v835_v44, -1e+30 }
 0x732   : > { %v1186_v46 = vpop.f32.mrf.mxu0  ;;  %v842_v47 = vsel %vm318_vm2, %v841_v45, -inf }
 0x733   : > { %843 = vmax.xlane.f32.xlu0 %v842_v47 }
 0x734   : > { %v838_v48 = vpop.f32.mrf.mxu0 }
 0x736   : > { %v1187_v49 = vpop.f32.mrf.mxu0 }
 0x749   : > { %854 = vrot.lane.b32.xlu0 %v1635_v5, %s1467_s24 }
 0x7bc   : > { %v844_v50 = vpop.xlane.xlu0 %843 }
 0x7bd   : > { %v845_v51 = vsub.f32 %v841_v45, %v844_v50 }
 0x7bf   : > { %v846_v52 = vmul.f32 1.442695, %v845_v51 }
 0x7c0   : > { %v855_v53 = vpop.permute.xlu0 %854 }
 0x7c1   : > { %1296 = vpow2.f32 %v846_v52  ;;  %v860_v0 = vsel %vm383_vm4, %v855_v53, 0 }
 0x7c2   : > { %1189 = vmatpush3.bf16.msra.mxu1 %v860_v0 }
 0x7ce   : > { %v1297_v54 = vpop.eup %1296 }
 0x7cf   : > { %v848_v15 = vsel %vm318_vm2, %v1297_v54, 0.0 }
 0x7d0   : > { %849 = vadd.xlane.f32.xlu1 %v848_v15 }
 0x7eb   : > { %v784_v16 = vpop.f32.mrf.mxu1 }
 0x7ec   : > { %v790_v55 = vadd.f32 %v784_v16, %v1696_v11 }
 0x7ed   : > { %v1180_v57 = vpop.f32.mrf.mxu1 }
 0x7ef   : > { %v787_v5 = vpop.f32.mrf.mxu1 }
 0x7f1   : > { %v1181_v59 = vpop.f32.mrf.mxu1 }
 0x859   : > { %v850_v60 = vpop.xlane.xlu1 %849 }
 0x85a   : > { %1298 = vrcp.f32 %v850_v60 }
 0x867   : > { %v1299_v61 = vpop.eup %1298 }
 0x868   : > { %v852_v62 = vmul.f32 %v1299_v61, %v1297_v54 }
 0x86a   : > { %v853_v63 = vpack.c.bf16 %v852_v62, %v852_v62 }
 0x86c   : > { %1191 = vmatmul.mubr.msk.bf16.vlgmr.msra.gmra.mxu1 %vm318_vm2, %v853_v63 }
 0x92c   : > { %v896_v1 = vpop.f32.mrf.mxu1 }
 0x92d   : > { %v902_v2 = vpack.c.bf16 %v896_v1, %v896_v1 }
 0x92e   : > { %v1192_v3 = vpop.f32.mrf.mxu1 }
 0x92f   : > { %1197 = vmatmul.mubr.msk.bf16.vlgmr.msra.gmra.mxu0 %vm318_vm2, %v902_v2 }
 0x930   : > { %v899_v4 = vpop.f32.mrf.mxu1 }
 0x932   : > { %v1193_v6 = vpop.f32.mrf.mxu1 }
 0x9ef   : > { %v943_v8 = vpop.f32.mrf.mxu0 }
 0x9f0   : > { %v949_v9 = vadd.f32 %v943_v8, %v790_v55 }
 0x9f1   : > { %v1198_v10 = vpop.f32.mrf.mxu0 }
 0x9f2   : > { %v956_v11 = vadd.f32 %v1088_v7, %v949_v9 }
 0x9f3   : > { %v946_v12 = vpop.f32.mrf.mxu0 }
 0x9f4   : > { %957 = vst.msk [vmem:[%s241_s10] sm:$0xff] %vm260_vm1, %v956_v11 }
 0x9f5   : > { %v1199_v13 = vpop.f32.mrf.mxu0 }
 0x9f6   : > { %1393 = shalt.err (!%p1390_p9)
}
 0x9f7   : > { %s1394_s25 = scalar_lea.hbm %s1740_s5, 128  ;;  %s1398_s24 = scalar_lea.hbm %s1788_s4, 256 }
 0x9f8   : > { %p1395_p13 = scmp.ne.s32.totalorder %s1740_s5, %s1394_s25  ;;  %p1399_p0 = scmp.lt.s32.totalorder %s1740_s5, %s1788_s4 }
 0x9f9   : > { %p1400_p4 = scmp.lt.s32.totalorder %s1398_s24, %s1394_s25 }
 0x9fa   : > { %p1396_p5 = pnand %p1395_p13, %p1804_p11 }
 0x9fb   : > { %p1401_p8 = por %p1400_p4, %p1399_p0 }
 0x9fc   : > { %p1397_p10 = pneg %p1396_p5 }
 0x9fe   : > { %p1402_p3 = pnand %p1401_p8, %p1397_p10 }
 0xa00   : > { %1405 = shalt.err (!%p1402_p3)
}
 0xa01   : > { %1210 = dma.vmem_to_hbm [thread:$0]  (%p1804_p11), %s1742_s21, 128, %s1740_s5, %s959_s19  }
 0xa02 PF: > { %s984_s8 = sand.u32 1, %s1436_s15   ;;  %p1805_p1 = scmp.ne.s32.totalorder %s1794_s22, 0 }
 0xa03   : > { %p1806_p2 = scmp.ge.s32.totalorder %s1448_s18, 2  ;;  %s985_s9 = scalar_lea.sflag [#allocation4], %s984_s8 }
 0xa05   : > { %p1224_p6 = pnand %p1806_p2, %p1805_p1 }
 0xa07   : > { %p1225_p12 = pneg %p1224_p6 }
 0xa09   : > { %1431 = dma.done.wait (%p1225_p12), %s985_s9, 128  }
 0xa0a   : > { %1433 = vsyncadd (%p1225_p12), %s985_s9, 4294967168  ;;  %p18_p7 = scmp.ge.s32.totalorder %s1566_s11, 4   ;;  %s1807_s15 = smov %s1440_s16 }
 0xa0b   : > { %s1808_s16 = smov %s1444_s17  ;;  %s1809_s17 = smov %s1582_s20 }
 0xa0c   : > { %s1810_s18 = smov %s1566_s11  ;;  %20 = sbr.rel (!%p18_p7) target bundleno = 6 (0x6), region = 89 }
 0xa11   :  { %990 = vsyncpa [#allocation3], 1 }
 0xa12   :  { %992 = vsyncpa [#allocation3 + $0x1], 1 }
 0xa13   :  { %993 = vsyncpa [#allocation6], 1 }
 0xa14   :  { %994 = vsyncpa [#allocation4], 1 }
 0xa15   :  { %996 = vsyncpa [#allocation4 + $0x1], 1 }

</bundles_post_ra>
